<compile_context>
chip_gen: v7x
topology: tpu7x:2x2x1
jax: 0.10.0
libtpu: 0.0.40
codegen_flags: <defaults>
</compile_context>

<pallas_src>
import functools

import jax
import jax.numpy as jnp
from jax.experimental import pallas as pl
from jax.experimental.pallas import tpu as pltpu


def _round_up(n, m):
    return ((n + m - 1) // m) * m


# ---------------------------------------------------------------------------
# Hardware-aware tiling helpers
# ---------------------------------------------------------------------------
def _num_tensorcores():
    """2 on v7x (megacore batch split pays off), 1 elsewhere."""
    try:
        kind = jax.devices()[0].device_kind.lower()
    except Exception:
        return 1
    return 2 if ("v7" in kind or "7x" in kind) else 1


def _choose_vmem_limit():
    """Explicit scoped-VMEM limit (defaults are only 16/32 MiB)."""
    try:
        cap = int(pltpu.get_tpu_info().vmem_capacity_bytes)
    except Exception:
        cap = 64 * 1024 * 1024          # conservative fallback (v7x physical per TC)
    limit = (cap * 3) // 4              # headroom for compiler-internal scratch
    return max(min(limit, 100 * 1024 * 1024), 32 * 1024 * 1024)


def _choose_batch_tile(bp, num_tc):
    # Split batch across TensorCores only when there are >=2 TCs and each half stays
    # a useful sublane-aligned M.  On 1-TC chips return the full (padded) batch.
    if num_tc >= 2 and bp % (8 * num_tc) == 0:
        return bp // num_tc
    return bp


def _choose_time_block(tp, b_tile, fin_p, hidden_p, out_bytes, vmem_limit):
    """Largest time block whose VMEM footprint (weights + buffers + scratch) fits."""
    g = 4 * hidden_p
    fixed = (2 * fin_p * g * 2          # W_ih  (bf16, double buffered)
             + 2 * hidden_p * g * 2     # U     (bf16, double buffered)
             + 2 * g * 4                # bias  (f32,  double buffered)
             + 2 * b_tile * hidden_p * 4)   # h, c scratch (f32)
    budget = vmem_limit - fixed - (2 << 20)  # extra headroom
    for cand in (256, 128, 64, 32, 16, 8, 4, 2, 1):
        if tp % cand:
            continue
        per_block = (2 * cand * b_tile * fin_p * 2            # x block   (bf16, 2 bufs)
                     + 2 * cand * b_tile * hidden_p * out_bytes  # out block (2 bufs)
                     + cand * b_tile * g * 4)                  # wx scratch (f32)
        if per_block <= budget:
            return cand
    return 1


# ---------------------------------------------------------------------------
# Fused LSTM layer kernel: input projection + sequential recurrence per time block
# ---------------------------------------------------------------------------
def _lstm_fused_kernel(x_ref, wih_ref, bias_ref, u_ref, out_ref,
                       wx_scr, h_scr, c_scr, *, hidden_p):
    # x_ref   : [T_BLOCK, B_TILE, Fin_p] bf16          (time block of inputs)
    # wih_ref : [Fin_p, 4Hp]            bf16 (resident)
    # bias_ref: [1, 4Hp]                f32  (resident, b_ih + b_hh fused)
    # u_ref   : [Hp, 4Hp]               bf16 (resident recurrent weight)
    # out_ref : [T_BLOCK, B_TILE, Hp]   bf16 (intermediate layers) / f32 (final layer)
    # wx_scr  : [T_BLOCK, B_TILE, 4Hp]  f32  VMEM scratch (never touches HBM)
    # h_scr, c_scr: [B_TILE, Hp]        f32  persistent state across time blocks
    tb, bt, fin = x_ref.shape
    g = 4 * hidden_p
    hp = hidden_p

    @pl.when(pl.program_id(1) == 0)          # new batch block -> zero initial state
    def _():
        h_scr[...] = jnp.zeros_like(h_scr)
        c_scr[...] = jnp.zeros_like(c_scr)

    # Fused input projection for the whole time block: one large MXU matmul, so the
    # W_ih weight tile is latched once per block instead of once per timestep, and
    # wx never leaves VMEM.  (B_TILE % 8 == 0 and Fin_p % 128 == 0 make the reshapes
    # pure layout no-ops.)
    x2d = x_ref[...].reshape(tb * bt, fin)
    wx2d = jnp.dot(x2d, wih_ref[...], preferred_element_type=jnp.float32) + bias_ref[...]
    wx_scr[...] = wx2d.reshape(tb, bt, g)

    def step(t, carry):
        h, c = carry
        # gates: [B_TILE, 4Hp] = wx_t + h @ U  (bf16 MXU operands, f32 accumulation)
        gates = wx_scr[t] + jnp.dot(h.astype(jnp.bfloat16), u_ref[...],
                                    preferred_element_type=jnp.float32)
        # Gate order is (i, f, o, g): sigmoids on one contiguous 3Hp slab, tanh on the last.
        sig = jax.nn.sigmoid(gates[:, : 3 * hp])
        g_g = jnp.tanh(gates[:, 3 * hp:])
        i_g = sig[:, 0 * hp: 1 * hp]
        f_g = sig[:, 1 * hp: 2 * hp]
        o_g = sig[:, 2 * hp: 3 * hp]
        c_new = f_g * c + i_g * g_g            # state math stays f32
        h_new = o_g * jnp.tanh(c_new)
        out_ref[t] = h_new.astype(out_ref.dtype)
        return h_new, c_new

    h_fin, c_fin = jax.lax.fori_loop(
        0, tb, step, (h_scr[...], c_scr[...]), unroll=min(tb, 8))
    h_scr[...] = h_fin
    c_scr[...] = c_fin


def lstm_layer_forward(x_tm, w_ih_t, bias, w_hh_t, hidden_p, out_dtype,
                       num_tc, vmem_limit):
    """One LSTM layer, time-major. x_tm: [Tp, Bp, Fin_p] bf16 -> [Tp, Bp, Hp] out_dtype."""
    tp, bp, fin_p = x_tm.shape
    g = 4 * hidden_p

    b_tile = _choose_batch_tile(bp, num_tc)
    out_bytes = jnp.dtype(out_dtype).itemsize
    t_block = _choose_time_block(tp, b_tile, fin_p, hidden_p, out_bytes, vmem_limit)

    kernel = functools.partial(_lstm_fused_kernel, hidden_p=hidden_p)
    return pl.pallas_call(
        kernel,
        out_shape=jax.ShapeDtypeStruct((tp, bp, hidden_p), out_dtype),
        grid=(bp // b_tile, tp // t_block),
        in_specs=[
            pl.BlockSpec((t_block, b_tile, fin_p), lambda b, i: (i, b, 0)),  # x time block
            pl.BlockSpec((fin_p, g), lambda b, i: (0, 0)),                   # W_ih (resident)
            pl.BlockSpec((1, g), lambda b, i: (0, 0)),                       # bias (resident)
            pl.BlockSpec((hidden_p, g), lambda b, i: (0, 0)),                # U    (resident)
        ],
        out_specs=pl.BlockSpec((t_block, b_tile, hidden_p), lambda b, i: (i, b, 0)),
        scratch_shapes=[
            pltpu.VMEM((t_block, b_tile, g), jnp.float32),     # wx for the time block
            pltpu.VMEM((b_tile, hidden_p), jnp.float32),       # h state
            pltpu.VMEM((b_tile, hidden_p), jnp.float32),       # c state
        ],
        compiler_params=pltpu.CompilerParams(
            # batch blocks are independent (megacore on v7x); time is strictly sequential
            dimension_semantics=("parallel", "arbitrary"),
            vmem_limit_bytes=vmem_limit,
        ),
        cost_estimate=pl.CostEstimate(
            flops=2 * tp * bp * (fin_p + hidden_p) * g,
            transcendentals=5 * tp * bp * hidden_p,
            bytes_accessed=(tp * bp * fin_p * 2 + fin_p * g * 2 + hidden_p * g * 2
                            + g * 4 + tp * bp * hidden_p * out_bytes),
        ),
    )(x_tm, w_ih_t, bias, w_hh_t)


# ---------------------------------------------------------------------------
# Parameter init (deterministic, mirrors PyTorch LSTM shapes + rnn_init orthogonal hh)
# and packing into padded / bf16 / gate-reordered kernel layout
# ---------------------------------------------------------------------------
def init_lstm_params(key, input_dim, hidden, num_layers):
    """Raw (unpadded, f32) parameters: list of (w_ih [4H,in], w_hh [4H,H], b_ih, b_hh)."""
    params = []
    cur = input_dim
    k_scale = 1.0 / (hidden ** 0.5)
    for _ in range(num_layers):
        key, k1, k2, k3, k4 = jax.random.split(key, 5)
        w_ih = jax.random.uniform(k1, (4 * hidden, cur), jnp.float32, -k_scale, k_scale)
        # re_init=True -> orthogonal weight_hh (orthonormal columns via reduced QR)
        w_hh_raw = jax.random.normal(k2, (4 * hidden, hidden), jnp.float32)
        q, _ = jnp.linalg.qr(w_hh_raw)
        w_hh = q[:, :hidden]
        b_ih = jax.random.uniform(k3, (4 * hidden,), jnp.float32, -k_scale, k_scale)
        b_hh = jax.random.uniform(k4, (4 * hidden,), jnp.float32, -k_scale, k_scale)
        params.append((w_ih, w_hh, b_ih, b_hh))
        cur = hidden
    return params


def _pack_gate_cols(mat, h, hp):
    """[rows, 4h] in torch gate order (i,f,g,o) -> [rows, 4hp] in kernel order (i,f,o,g),
    each gate slab zero-padded to hp lanes."""
    i_b, f_b, g_b, o_b = jnp.split(mat, 4, axis=1)
    blocks = (i_b, f_b, o_b, g_b)
    if hp == h:
        return jnp.concatenate(blocks, axis=1)
    return jnp.concatenate([jnp.pad(b, ((0, 0), (0, hp - h))) for b in blocks], axis=1)


def pack_params(raw_params, hidden):
    """Pad gate slabs to Hp=round_up(H,128) lanes, pad input rows (layer 0 to a x128
    feature dim), reorder gates to (i,f,o,g), cast weights to bf16."""
    hp = _round_up(hidden, 128)
    packed = []
    for li, (w_ih, w_hh, b_ih, b_hh) in enumerate(raw_params):
        in_dim = w_ih.shape[1]
        in_pad = _round_up(in_dim, 128) if li == 0 else hp   # later layers consume [*, Hp]
        w_ih_t = _pack_gate_cols(w_ih.T, hidden, hp)                 # [in, 4Hp]
        w_ih_t = jnp.pad(w_ih_t, ((0, in_pad - in_dim), (0, 0)))     # [in_pad, 4Hp]
        w_hh_t = _pack_gate_cols(w_hh.T, hidden, hp)                 # [H, 4Hp]
        w_hh_t = jnp.pad(w_hh_t, ((0, hp - hidden), (0, 0)))         # [Hp, 4Hp]
        bias = _pack_gate_cols((b_ih + b_hh).reshape(1, -1), hidden, hp)  # [1, 4Hp]
        packed.append((w_ih_t.astype(jnp.bfloat16),
                       w_hh_t.astype(jnp.bfloat16),
                       bias.astype(jnp.float32)))
    return packed


def lstm_forward(x, packed_params, hidden):
    """Full LSTM forward. x: [B, T, ...feat] -> (output [B,T,H], h [L,B,H])."""
    if x.ndim == 4:
        x = x.reshape(x.shape[0], x.shape[1], x.shape[2] * x.shape[3])
    b, t, f = x.shape
    bp = _round_up(b, 8)
    tp = _round_up(t, 8)
    hp = _round_up(hidden, 128)
    fp = packed_params[0][0].shape[0]            # padded layer-0 feature dim

    num_tc = _num_tensorcores()
    vmem_limit = _choose_vmem_limit()

    # Pad batch / time / features once, cast to bf16 once, go time-major once.
    xp = jnp.pad(x.astype(jnp.bfloat16), ((0, bp - b), (0, tp - t), (0, fp - f)))
    cur = xp.transpose(1, 0, 2)                  # [Tp, Bp, Fp] bf16

    num_layers = len(packed_params)
    last_h = []
    for li, (w_ih_t, w_hh_t, bias) in enumerate(packed_params):
        out_dtype = jnp.float32 if li == num_layers - 1 else jnp.bfloat16
        cur = lstm_layer_forward(cur, w_ih_t, bias, w_hh_t, hp, out_dtype,
                                 num_tc, vmem_limit)        # [Tp, Bp, Hp]
        last_h.append(cur[t - 1, :b, :hidden].astype(jnp.float32))

    out = jnp.transpose(cur[:t], (1, 0, 2))[:b, :, :hidden]  # [B, T, H] f32
    # torch: stack(dim=1) then transpose(0,1)  ==  stack along axis 0
    h = jnp.stack(last_h, axis=0)                             # [L, B, H]
    return out, h


# ---------------------------------------------------------------------------
# Pure-JAX references (lax.scan) for correctness checks
# ---------------------------------------------------------------------------
def lstm_forward_ref(x, raw_params, hidden, matmul_dtype=jnp.float32):
    if x.ndim == 4:
        x = x.reshape(x.shape[0], x.shape[1], x.shape[2] * x.shape[3])
    out = x.astype(jnp.float32)
    last_h = []
    for (w_ih, w_hh, b_ih, b_hh) in raw_params:
        b = out.shape[0]
        w_ih_t = w_ih.T.astype(matmul_dtype)
        w_hh_t = w_hh.T.astype(matmul_dtype)
        bias = (b_ih + b_hh).astype(jnp.float32)

        def step(carry, xt, w_ih_t=w_ih_t, w_hh_t=w_hh_t, bias=bias):
            h, c = carry
            wx = jnp.dot(xt.astype(matmul_dtype), w_ih_t,
                         preferred_element_type=jnp.float32) + bias
            gates = wx + jnp.dot(h.astype(matmul_dtype), w_hh_t,
                                 preferred_element_type=jnp.float32)
            i = jax.nn.sigmoid(gates[:, :hidden])
            f = jax.nn.sigmoid(gates[:, hidden:2 * hidden])
            g = jnp.tanh(gates[:, 2 * hidden:3 * hidden])
            o = jax.nn.sigmoid(gates[:, 3 * hidden:])
            c = f * c + i * g
            h = o * jnp.tanh(c)
            return (h, c), h

        init = (jnp.zeros((b, hidden), jnp.float32),
                jnp.zeros((b, hidden), jnp.float32))
        _, ys = jax.lax.scan(step, init, out.transpose(1, 0, 2))
        out = ys.transpose(1, 0, 2)
        last_h.append(out[:, -1, :])
    return out, jnp.stack(last_h, axis=0)


if __name__ == "__main__":
    key = jax.random.PRNGKey(0)
    B, T, C, S = 2, 8, 4, 4        # input_shape = [B, T, C, S] -> fea_dim = 16
    hidden = 32
    num_layers = 2

    kx, kp = jax.random.split(key)
    x = jax.random.normal(kx, (B, T, C, S), jnp.float32)
    raw_params = init_lstm_params(kp, C * S, hidden, num_layers)
    packed = pack_params(raw_params, hidden)

    out, h = lstm_forward(x, packed, hidden)
    out = jax.block_until_ready(out)
    h = jax.block_until_ready(h)

    assert out.shape == (B, T, hidden), out.shape
    assert h.shape == (num_layers, B, hidden), h.shape

    # Check 1: tight comparison vs a reference that mimics the kernel numerics
    # (bf16 MXU operands, f32 accumulation/state). Intermediate-layer hidden states
    # are stored in bf16 by the kernel, so the h check allows one bf16 ulp.
    out_bf, h_bf = lstm_forward_ref(x, raw_params, hidden, matmul_dtype=jnp.bfloat16)
    assert jnp.allclose(out, out_bf, atol=5e-4, rtol=5e-4)
    assert jnp.allclose(h, h_bf, atol=5e-3, rtol=5e-3)

    # Check 2: semantic comparison vs the full-f32 LSTM (PyTorch semantics); bf16
    # operand/activation rounding keeps the deviation well below this tolerance.
    out_f32, h_f32 = lstm_forward_ref(x, raw_params, hidden, matmul_dtype=jnp.float32)
    assert jnp.allclose(out, out_f32, atol=2e-2, rtol=2e-2)
    assert jnp.allclose(h, h_f32, atol=2e-2, rtol=2e-2)

    print("KERNEL_OK")
</pallas_src>

<mosaic_0001>
module attributes {stable_mosaic.version = 11 : i64} {
  func.func @_lstm_fused_kernel(%arg0: i32, %arg1: i32, %arg2: memref<8x8x128xbf16, #tpu.memory_space<vmem>>, %arg3: memref<128x512xbf16, #tpu.memory_space<vmem>>, %arg4: memref<1x512xf32, #tpu.memory_space<vmem>>, %arg5: memref<128x512xbf16, #tpu.memory_space<vmem>>, %arg6: memref<8x8x128xbf16, #tpu.memory_space<vmem>>, %arg7: memref<8x8x512xf32, #tpu.memory_space<vmem>>, %arg8: memref<8x128xf32, #tpu.memory_space<vmem>>, %arg9: memref<8x128xf32, #tpu.memory_space<vmem>>) attributes {dimension_semantics = [#tpu.dimension_semantics<parallel>, #tpu.dimension_semantics<arbitrary>], iteration_bounds = array<i64: 1, 1>, scalar_prefetch = 0 : i64, scratch_operands = 3 : i64, tpu.core_type = #tpu.core_type<tc>, window_params = [{transform_indices = @transform_0, window_bounds = array<i64: 8, 8, 128>}, {pipeline_mode = #tpu.pipeline_mode<synchronous>, transform_indices = @transform_1, window_bounds = array<i64: 128, 512>}, {pipeline_mode = #tpu.pipeline_mode<synchronous>, transform_indices = @transform_2, window_bounds = array<i64: 1, 512>}, {pipeline_mode = #tpu.pipeline_mode<synchronous>, transform_indices = @transform_3, window_bounds = array<i64: 128, 512>}, {transform_indices = @transform_4, window_bounds = array<i64: 8, 8, 128>}]} {
    %c0_i32 = arith.constant 0 : i32
    %0 = arith.cmpi eq, %arg1, %c0_i32 : i32
    %1 = arith.extui %0 : i1 to i32
    %c0_i32_0 = arith.constant 0 : i32
    %2 = arith.cmpi ne, %1, %c0_i32_0 : i32
    scf.if %2 {
      %cst_83 = arith.constant 0.000000e+00 : f32
      %240 = vector.broadcast %cst_83 : f32 to vector<8x128xf32>
      %c0_84 = arith.constant 0 : index
      %c0_85 = arith.constant 0 : index
      %241 = vector.load %arg8[%c0_84, %c0_85] : memref<8x128xf32, #tpu.memory_space<vmem>>, vector<8x128xf32>
      tpu.vector_store %arg8[%c0_84, %c0_85], %240 {strides = array<i32>} : memref<8x128xf32, #tpu.memory_space<vmem>>, vector<8x128xf32>,
      %cst_86 = arith.constant 0.000000e+00 : f32
      %242 = vector.broadcast %cst_86 : f32 to vector<8x128xf32>
      %c0_87 = arith.constant 0 : index
      %c0_88 = arith.constant 0 : index
      %243 = vector.load %arg9[%c0_87, %c0_88] : memref<8x128xf32, #tpu.memory_space<vmem>>, vector<8x128xf32>
      tpu.vector_store %arg9[%c0_87, %c0_88], %242 {strides = array<i32>} : memref<8x128xf32, #tpu.memory_space<vmem>>, vector<8x128xf32>,
    } else {
    }
    %c0 = arith.constant 0 : index
    %c0_1 = arith.constant 0 : index
    %c0_2 = arith.constant 0 : index
    %3 = vector.load %arg2[%c0, %c0_1, %c0_2] : memref<8x8x128xbf16, #tpu.memory_space<vmem>>, vector<8x8x128xbf16>
    %4 = vector.shape_cast %3 : vector<8x8x128xbf16> to vector<64x128xbf16>
    %c0_3 = arith.constant 0 : index
    %c0_4 = arith.constant 0 : index
    %5 = vector.load %arg3[%c0_3, %c0_4] : memref<128x512xbf16, #tpu.memory_space<vmem>>, vector<128x512xbf16>
    %cst = arith.constant dense<0.000000e+00> : vector<64x512xf32>
    %6 = tpu.matmul %4, %5, %cst {dimension_numbers = #tpu.dot_dimension_numbers<[1], [0], [0], [1], [0, 0, 1, 1], [], []>} : vector<64x128xbf16>, vector<128x512xbf16>, vector<64x512xf32> -> vector<64x512xf32>
    %c0_5 = arith.constant 0 : index
    %c0_6 = arith.constant 0 : index
    %7 = vector.load %arg4[%c0_5, %c0_6] : memref<1x512xf32, #tpu.memory_space<vmem>>, vector<1x512xf32>
    %8 = vector.broadcast %7 : vector<1x512xf32> to vector<64x512xf32>
    %9 = arith.addf %6, %8 : vector<64x512xf32>
    %10 = vector.shape_cast %9 : vector<64x512xf32> to vector<8x8x512xf32>
    %c0_7 = arith.constant 0 : index
    %c0_8 = arith.constant 0 : index
    %c0_9 = arith.constant 0 : index
    %11 = vector.load %arg7[%c0_7, %c0_8, %c0_9] : memref<8x8x512xf32, #tpu.memory_space<vmem>>, vector<8x8x512xf32>
    tpu.vector_store %arg7[%c0_7, %c0_8, %c0_9], %10 {strides = array<i32>} : memref<8x8x512xf32, #tpu.memory_space<vmem>>, vector<8x8x512xf32>,
    %c0_10 = arith.constant 0 : index
    %c0_11 = arith.constant 0 : index
    %12 = vector.load %arg8[%c0_10, %c0_11] : memref<8x128xf32, #tpu.memory_space<vmem>>, vector<8x128xf32>
    %c0_12 = arith.constant 0 : index
    %c0_13 = arith.constant 0 : index
    %13 = vector.load %arg9[%c0_12, %c0_13] : memref<8x128xf32, #tpu.memory_space<vmem>>, vector<8x128xf32>
    %c0_i32_14 = arith.constant 0 : i32
    %14 = arith.index_cast %c0_i32_14 : i32 to index
    %c0_15 = arith.constant 0 : index
    %c0_16 = arith.constant 0 : index
    %15 = vector.load %arg7[%14, %c0_15, %c0_16] : memref<8x8x512xf32, #tpu.memory_space<vmem>>, vector<1x8x512xf32>
    %16 = vector.shape_cast %15 : vector<1x8x512xf32> to vector<8x512xf32>
    %17 = arith.truncf %12 : vector<8x128xf32> to vector<8x128xbf16>
    %c0_17 = arith.constant 0 : index
    %c0_18 = arith.constant 0 : index
    %18 = vector.load %arg5[%c0_17, %c0_18] : memref<128x512xbf16, #tpu.memory_space<vmem>>, vector<128x512xbf16>
    %cst_19 = arith.constant dense<0.000000e+00> : vector<8x512xf32>
    %19 = tpu.matmul %17, %18, %cst_19 {dimension_numbers = #tpu.dot_dimension_numbers<[1], [0], [0], [1], [0, 0, 1, 1], [], []>} : vector<8x128xbf16>, vector<128x512xbf16>, vector<8x512xf32> -> vector<8x512xf32>
    %20 = arith.addf %16, %19 : vector<8x512xf32>
    %21 = vector.extract_strided_slice %20 {offsets = [0, 0], sizes = [8, 384], strides = [1, 1]} : vector<8x512xf32> to vector<8x384xf32>
    %22 = arith.negf %21 : vector<8x384xf32>
    %23 = math.exp %22 : vector<8x384xf32>
    %cst_20 = arith.constant 1.000000e+00 : f32
    %24 = vector.broadcast %cst_20 : f32 to vector<8x384xf32>
    %25 = arith.addf %24, %23 : vector<8x384xf32>
    %26 = arith.divf %24, %25 : vector<8x384xf32>
    %27 = vector.extract_strided_slice %20 {offsets = [0, 384], sizes = [8, 128], strides = [1, 1]} : vector<8x512xf32> to vector<8x128xf32>
    %28 = math.tanh %27 : vector<8x128xf32>
    %29 = vector.extract_strided_slice %26 {offsets = [0, 0], sizes = [8, 128], strides = [1, 1]} : vector<8x384xf32> to vector<8x128xf32>
    %30 = vector.extract_strided_slice %26 {offsets = [0, 128], sizes = [8, 128], strides = [1, 1]} : vector<8x384xf32> to vector<8x128xf32>
    %31 = vector.extract_strided_slice %26 {offsets = [0, 256], sizes = [8, 128], strides = [1, 1]} : vector<8x384xf32> to vector<8x128xf32>
    %32 = arith.mulf %30, %13 : vector<8x128xf32>
    %33 = arith.mulf %29, %28 : vector<8x128xf32>
    %34 = arith.addf %32, %33 : vector<8x128xf32>
    %35 = math.tanh %34 : vector<8x128xf32>
    %36 = arith.mulf %31, %35 : vector<8x128xf32>
    %37 = arith.truncf %36 : vector<8x128xf32> to vector<8x128xbf16>
    %38 = arith.index_cast %c0_i32_14 : i32 to index
    %c0_21 = arith.constant 0 : index
    %c0_22 = arith.constant 0 : index
    %39 = vector.load %arg6[%38, %c0_21, %c0_22] : memref<8x8x128xbf16, #tpu.memory_space<vmem>>, vector<1x8x128xbf16>
    %40 = vector.shape_cast %39 : vector<1x8x128xbf16> to vector<8x128xbf16>
    %41 = vector.shape_cast %37 : vector<8x128xbf16> to vector<1x8x128xbf16>
    tpu.vector_store %arg6[%38, %c0_21, %c0_22], %41 {strides = array<i32>} : memref<8x8x128xbf16, #tpu.memory_space<vmem>>, vector<1x8x128xbf16>,
    %c1_i32 = arith.constant 1 : i32
    %42 = arith.index_cast %c1_i32 : i32 to index
    %c0_23 = arith.constant 0 : index
    %c0_24 = arith.constant 0 : index
    %43 = vector.load %arg7[%42, %c0_23, %c0_24] : memref<8x8x512xf32, #tpu.memory_space<vmem>>, vector<1x8x512xf32>
    %44 = vector.shape_cast %43 : vector<1x8x512xf32> to vector<8x512xf32>
    %45 = arith.truncf %36 : vector<8x128xf32> to vector<8x128xbf16>
    %c0_25 = arith.constant 0 : index
    %c0_26 = arith.constant 0 : index
    %46 = vector.load %arg5[%c0_25, %c0_26] : memref<128x512xbf16, #tpu.memory_space<vmem>>, vector<128x512xbf16>
    %cst_27 = arith.constant dense<0.000000e+00> : vector<8x512xf32>
    %47 = tpu.matmul %45, %46, %cst_27 {dimension_numbers = #tpu.dot_dimension_numbers<[1], [0], [0], [1], [0, 0, 1, 1], [], []>} : vector<8x128xbf16>, vector<128x512xbf16>, vector<8x512xf32> -> vector<8x512xf32>
    %48 = arith.addf %44, %47 : vector<8x512xf32>
    %49 = vector.extract_strided_slice %48 {offsets = [0, 0], sizes = [8, 384], strides = [1, 1]} : vector<8x512xf32> to vector<8x384xf32>
    %50 = arith.negf %49 : vector<8x384xf32>
    %51 = math.exp %50 : vector<8x384xf32>
    %cst_28 = arith.constant 1.000000e+00 : f32
    %52 = vector.broadcast %cst_28 : f32 to vector<8x384xf32>
    %53 = arith.addf %52, %51 : vector<8x384xf32>
    %54 = arith.divf %52, %53 : vector<8x384xf32>
    %55 = vector.extract_strided_slice %48 {offsets = [0, 384], sizes = [8, 128], strides = [1, 1]} : vector<8x512xf32> to vector<8x128xf32>
    %56 = math.tanh %55 : vector<8x128xf32>
    %57 = vector.extract_strided_slice %54 {offsets = [0, 0], sizes = [8, 128], strides = [1, 1]} : vector<8x384xf32> to vector<8x128xf32>
    %58 = vector.extract_strided_slice %54 {offsets = [0, 128], sizes = [8, 128], strides = [1, 1]} : vector<8x384xf32> to vector<8x128xf32>
    %59 = vector.extract_strided_slice %54 {offsets = [0, 256], sizes = [8, 128], strides = [1, 1]} : vector<8x384xf32> to vector<8x128xf32>
    %60 = arith.mulf %58, %34 : vector<8x128xf32>
    %61 = arith.mulf %57, %56 : vector<8x128xf32>
    %62 = arith.addf %60, %61 : vector<8x128xf32>
    %63 = math.tanh %62 : vector<8x128xf32>
    %64 = arith.mulf %59, %63 : vector<8x128xf32>
    %65 = arith.truncf %64 : vector<8x128xf32> to vector<8x128xbf16>
    %66 = arith.index_cast %c1_i32 : i32 to index
    %c0_29 = arith.constant 0 : index
    %c0_30 = arith.constant 0 : index
    %67 = vector.load %arg6[%66, %c0_29, %c0_30] : memref<8x8x128xbf16, #tpu.memory_space<vmem>>, vector<1x8x128xbf16>
    %68 = vector.shape_cast %67 : vector<1x8x128xbf16> to vector<8x128xbf16>
    %69 = vector.shape_cast %65 : vector<8x128xbf16> to vector<1x8x128xbf16>
    tpu.vector_store %arg6[%66, %c0_29, %c0_30], %69 {strides = array<i32>} : memref<8x8x128xbf16, #tpu.memory_space<vmem>>, vector<1x8x128xbf16>,
    %c2_i32 = arith.constant 2 : i32
    %70 = arith.index_cast %c2_i32 : i32 to index
    %c0_31 = arith.constant 0 : index
    %c0_32 = arith.constant 0 : index
    %71 = vector.load %arg7[%70, %c0_31, %c0_32] : memref<8x8x512xf32, #tpu.memory_space<vmem>>, vector<1x8x512xf32>
    %72 = vector.shape_cast %71 : vector<1x8x512xf32> to vector<8x512xf32>
    %73 = arith.truncf %64 : vector<8x128xf32> to vector<8x128xbf16>
    %c0_33 = arith.constant 0 : index
    %c0_34 = arith.constant 0 : index
    %74 = vector.load %arg5[%c0_33, %c0_34] : memref<128x512xbf16, #tpu.memory_space<vmem>>, vector<128x512xbf16>
    %cst_35 = arith.constant dense<0.000000e+00> : vector<8x512xf32>
    %75 = tpu.matmul %73, %74, %cst_35 {dimension_numbers = #tpu.dot_dimension_numbers<[1], [0], [0], [1], [0, 0, 1, 1], [], []>} : vector<8x128xbf16>, vector<128x512xbf16>, vector<8x512xf32> -> vector<8x512xf32>
    %76 = arith.addf %72, %75 : vector<8x512xf32>
    %77 = vector.extract_strided_slice %76 {offsets = [0, 0], sizes = [8, 384], strides = [1, 1]} : vector<8x512xf32> to vector<8x384xf32>
    %78 = arith.negf %77 : vector<8x384xf32>
    %79 = math.exp %78 : vector<8x384xf32>
    %cst_36 = arith.constant 1.000000e+00 : f32
    %80 = vector.broadcast %cst_36 : f32 to vector<8x384xf32>
    %81 = arith.addf %80, %79 : vector<8x384xf32>
    %82 = arith.divf %80, %81 : vector<8x384xf32>
    %83 = vector.extract_strided_slice %76 {offsets = [0, 384], sizes = [8, 128], strides = [1, 1]} : vector<8x512xf32> to vector<8x128xf32>
    %84 = math.tanh %83 : vector<8x128xf32>
    %85 = vector.extract_strided_slice %82 {offsets = [0, 0], sizes = [8, 128], strides = [1, 1]} : vector<8x384xf32> to vector<8x128xf32>
    %86 = vector.extract_strided_slice %82 {offsets = [0, 128], sizes = [8, 128], strides = [1, 1]} : vector<8x384xf32> to vector<8x128xf32>
    %87 = vector.extract_strided_slice %82 {offsets = [0, 256], sizes = [8, 128], strides = [1, 1]} : vector<8x384xf32> to vector<8x128xf32>
    %88 = arith.mulf %86, %62 : vector<8x128xf32>
    %89 = arith.mulf %85, %84 : vector<8x128xf32>
    %90 = arith.addf %88, %89 : vector<8x128xf32>
    %91 = math.tanh %90 : vector<8x128xf32>
    %92 = arith.mulf %87, %91 : vector<8x128xf32>
    %93 = arith.truncf %92 : vector<8x128xf32> to vector<8x128xbf16>
    %94 = arith.index_cast %c2_i32 : i32 to index
    %c0_37 = arith.constant 0 : index
    %c0_38 = arith.constant 0 : index
    %95 = vector.load %arg6[%94, %c0_37, %c0_38] : memref<8x8x128xbf16, #tpu.memory_space<vmem>>, vector<1x8x128xbf16>
    %96 = vector.shape_cast %95 : vector<1x8x128xbf16> to vector<8x128xbf16>
    %97 = vector.shape_cast %93 : vector<8x128xbf16> to vector<1x8x128xbf16>
    tpu.vector_store %arg6[%94, %c0_37, %c0_38], %97 {strides = array<i32>} : memref<8x8x128xbf16, #tpu.memory_space<vmem>>, vector<1x8x128xbf16>,
    %c3_i32 = arith.constant 3 : i32
    %98 = arith.index_cast %c3_i32 : i32 to index
    %c0_39 = arith.constant 0 : index
    %c0_40 = arith.constant 0 : index
    %99 = vector.load %arg7[%98, %c0_39, %c0_40] : memref<8x8x512xf32, #tpu.memory_space<vmem>>, vector<1x8x512xf32>
    %100 = vector.shape_cast %99 : vector<1x8x512xf32> to vector<8x512xf32>
    %101 = arith.truncf %92 : vector<8x128xf32> to vector<8x128xbf16>
    %c0_41 = arith.constant 0 : index
    %c0_42 = arith.constant 0 : index
    %102 = vector.load %arg5[%c0_41, %c0_42] : memref<128x512xbf16, #tpu.memory_space<vmem>>, vector<128x512xbf16>
    %cst_43 = arith.constant dense<0.000000e+00> : vector<8x512xf32>
    %103 = tpu.matmul %101, %102, %cst_43 {dimension_numbers = #tpu.dot_dimension_numbers<[1], [0], [0], [1], [0, 0, 1, 1], [], []>} : vector<8x128xbf16>, vector<128x512xbf16>, vector<8x512xf32> -> vector<8x512xf32>
    %104 = arith.addf %100, %103 : vector<8x512xf32>
    %105 = vector.extract_strided_slice %104 {offsets = [0, 0], sizes = [8, 384], strides = [1, 1]} : vector<8x512xf32> to vector<8x384xf32>
    %106 = arith.negf %105 : vector<8x384xf32>
    %107 = math.exp %106 : vector<8x384xf32>
    %cst_44 = arith.constant 1.000000e+00 : f32
    %108 = vector.broadcast %cst_44 : f32 to vector<8x384xf32>
    %109 = arith.addf %108, %107 : vector<8x384xf32>
    %110 = arith.divf %108, %109 : vector<8x384xf32>
    %111 = vector.extract_strided_slice %104 {offsets = [0, 384], sizes = [8, 128], strides = [1, 1]} : vector<8x512xf32> to vector<8x128xf32>
    %112 = math.tanh %111 : vector<8x128xf32>
    %113 = vector.extract_strided_slice %110 {offsets = [0, 0], sizes = [8, 128], strides = [1, 1]} : vector<8x384xf32> to vector<8x128xf32>
    %114 = vector.extract_strided_slice %110 {offsets = [0, 128], sizes = [8, 128], strides = [1, 1]} : vector<8x384xf32> to vector<8x128xf32>
    %115 = vector.extract_strided_slice %110 {offsets = [0, 256], sizes = [8, 128], strides = [1, 1]} : vector<8x384xf32> to vector<8x128xf32>
    %116 = arith.mulf %114, %90 : vector<8x128xf32>
    %117 = arith.mulf %113, %112 : vector<8x128xf32>
    %118 = arith.addf %116, %117 : vector<8x128xf32>
    %119 = math.tanh %118 : vector<8x128xf32>
    %120 = arith.mulf %115, %119 : vector<8x128xf32>
    %121 = arith.truncf %120 : vector<8x128xf32> to vector<8x128xbf16>
    %122 = arith.index_cast %c3_i32 : i32 to index
    %c0_45 = arith.constant 0 : index
    %c0_46 = arith.constant 0 : index
    %123 = vector.load %arg6[%122, %c0_45, %c0_46] : memref<8x8x128xbf16, #tpu.memory_space<vmem>>, vector<1x8x128xbf16>
    %124 = vector.shape_cast %123 : vector<1x8x128xbf16> to vector<8x128xbf16>
    %125 = vector.shape_cast %121 : vector<8x128xbf16> to vector<1x8x128xbf16>
    tpu.vector_store %arg6[%122, %c0_45, %c0_46], %125 {strides = array<i32>} : memref<8x8x128xbf16, #tpu.memory_space<vmem>>, vector<1x8x128xbf16>,
    %c4_i32 = arith.constant 4 : i32
    %126 = arith.index_cast %c4_i32 : i32 to index
    %c0_47 = arith.constant 0 : index
    %c0_48 = arith.constant 0 : index
    %127 = vector.load %arg7[%126, %c0_47, %c0_48] : memref<8x8x512xf32, #tpu.memory_space<vmem>>, vector<1x8x512xf32>
    %128 = vector.shape_cast %127 : vector<1x8x512xf32> to vector<8x512xf32>
    %129 = arith.truncf %120 : vector<8x128xf32> to vector<8x128xbf16>
    %c0_49 = arith.constant 0 : index
    %c0_50 = arith.constant 0 : index
    %130 = vector.load %arg5[%c0_49, %c0_50] : memref<128x512xbf16, #tpu.memory_space<vmem>>, vector<128x512xbf16>
    %cst_51 = arith.constant dense<0.000000e+00> : vector<8x512xf32>
    %131 = tpu.matmul %129, %130, %cst_51 {dimension_numbers = #tpu.dot_dimension_numbers<[1], [0], [0], [1], [0, 0, 1, 1], [], []>} : vector<8x128xbf16>, vector<128x512xbf16>, vector<8x512xf32> -> vector<8x512xf32>
    %132 = arith.addf %128, %131 : vector<8x512xf32>
    %133 = vector.extract_strided_slice %132 {offsets = [0, 0], sizes = [8, 384], strides = [1, 1]} : vector<8x512xf32> to vector<8x384xf32>
    %134 = arith.negf %133 : vector<8x384xf32>
    %135 = math.exp %134 : vector<8x384xf32>
    %cst_52 = arith.constant 1.000000e+00 : f32
    %136 = vector.broadcast %cst_52 : f32 to vector<8x384xf32>
    %137 = arith.addf %136, %135 : vector<8x384xf32>
    %138 = arith.divf %136, %137 : vector<8x384xf32>
    %139 = vector.extract_strided_slice %132 {offsets = [0, 384], sizes = [8, 128], strides = [1, 1]} : vector<8x512xf32> to vector<8x128xf32>
    %140 = math.tanh %139 : vector<8x128xf32>
    %141 = vector.extract_strided_slice %138 {offsets = [0, 0], sizes = [8, 128], strides = [1, 1]} : vector<8x384xf32> to vector<8x128xf32>
    %142 = vector.extract_strided_slice %138 {offsets = [0, 128], sizes = [8, 128], strides = [1, 1]} : vector<8x384xf32> to vector<8x128xf32>
    %143 = vector.extract_strided_slice %138 {offsets = [0, 256], sizes = [8, 128], strides = [1, 1]} : vector<8x384xf32> to vector<8x128xf32>
    %144 = arith.mulf %142, %118 : vector<8x128xf32>
    %145 = arith.mulf %141, %140 : vector<8x128xf32>
    %146 = arith.addf %144, %145 : vector<8x128xf32>
    %147 = math.tanh %146 : vector<8x128xf32>
    %148 = arith.mulf %143, %147 : vector<8x128xf32>
    %149 = arith.truncf %148 : vector<8x128xf32> to vector<8x128xbf16>
    %150 = arith.index_cast %c4_i32 : i32 to index
    %c0_53 = arith.constant 0 : index
    %c0_54 = arith.constant 0 : index
    %151 = vector.load %arg6[%150, %c0_53, %c0_54] : memref<8x8x128xbf16, #tpu.memory_space<vmem>>, vector<1x8x128xbf16>
    %152 = vector.shape_cast %151 : vector<1x8x128xbf16> to vector<8x128xbf16>
    %153 = vector.shape_cast %149 : vector<8x128xbf16> to vector<1x8x128xbf16>
    tpu.vector_store %arg6[%150, %c0_53, %c0_54], %153 {strides = array<i32>} : memref<8x8x128xbf16, #tpu.memory_space<vmem>>, vector<1x8x128xbf16>,
    %c5_i32 = arith.constant 5 : i32
    %154 = arith.index_cast %c5_i32 : i32 to index
    %c0_55 = arith.constant 0 : index
    %c0_56 = arith.constant 0 : index
    %155 = vector.load %arg7[%154, %c0_55, %c0_56] : memref<8x8x512xf32, #tpu.memory_space<vmem>>, vector<1x8x512xf32>
    %156 = vector.shape_cast %155 : vector<1x8x512xf32> to vector<8x512xf32>
    %157 = arith.truncf %148 : vector<8x128xf32> to vector<8x128xbf16>
    %c0_57 = arith.constant 0 : index
    %c0_58 = arith.constant 0 : index
    %158 = vector.load %arg5[%c0_57, %c0_58] : memref<128x512xbf16, #tpu.memory_space<vmem>>, vector<128x512xbf16>
    %cst_59 = arith.constant dense<0.000000e+00> : vector<8x512xf32>
    %159 = tpu.matmul %157, %158, %cst_59 {dimension_numbers = #tpu.dot_dimension_numbers<[1], [0], [0], [1], [0, 0, 1, 1], [], []>} : vector<8x128xbf16>, vector<128x512xbf16>, vector<8x512xf32> -> vector<8x512xf32>
    %160 = arith.addf %156, %159 : vector<8x512xf32>
    %161 = vector.extract_strided_slice %160 {offsets = [0, 0], sizes = [8, 384], strides = [1, 1]} : vector<8x512xf32> to vector<8x384xf32>
    %162 = arith.negf %161 : vector<8x384xf32>
    %163 = math.exp %162 : vector<8x384xf32>
    %cst_60 = arith.constant 1.000000e+00 : f32
    %164 = vector.broadcast %cst_60 : f32 to vector<8x384xf32>
    %165 = arith.addf %164, %163 : vector<8x384xf32>
    %166 = arith.divf %164, %165 : vector<8x384xf32>
    %167 = vector.extract_strided_slice %160 {offsets = [0, 384], sizes = [8, 128], strides = [1, 1]} : vector<8x512xf32> to vector<8x128xf32>
    %168 = math.tanh %167 : vector<8x128xf32>
    %169 = vector.extract_strided_slice %166 {offsets = [0, 0], sizes = [8, 128], strides = [1, 1]} : vector<8x384xf32> to vector<8x128xf32>
    %170 = vector.extract_strided_slice %166 {offsets = [0, 128], sizes = [8, 128], strides = [1, 1]} : vector<8x384xf32> to vector<8x128xf32>
    %171 = vector.extract_strided_slice %166 {offsets = [0, 256], sizes = [8, 128], strides = [1, 1]} : vector<8x384xf32> to vector<8x128xf32>
    %172 = arith.mulf %170, %146 : vector<8x128xf32>
    %173 = arith.mulf %169, %168 : vector<8x128xf32>
    %174 = arith.addf %172, %173 : vector<8x128xf32>
    %175 = math.tanh %174 : vector<8x128xf32>
    %176 = arith.mulf %171, %175 : vector<8x128xf32>
    %177 = arith.truncf %176 : vector<8x128xf32> to vector<8x128xbf16>
    %178 = arith.index_cast %c5_i32 : i32 to index
    %c0_61 = arith.constant 0 : index
    %c0_62 = arith.constant 0 : index
    %179 = vector.load %arg6[%178, %c0_61, %c0_62] : memref<8x8x128xbf16, #tpu.memory_space<vmem>>, vector<1x8x128xbf16>
    %180 = vector.shape_cast %179 : vector<1x8x128xbf16> to vector<8x128xbf16>
    %181 = vector.shape_cast %177 : vector<8x128xbf16> to vector<1x8x128xbf16>
    tpu.vector_store %arg6[%178, %c0_61, %c0_62], %181 {strides = array<i32>} : memref<8x8x128xbf16, #tpu.memory_space<vmem>>, vector<1x8x128xbf16>,
    %c6_i32 = arith.constant 6 : i32
    %182 = arith.index_cast %c6_i32 : i32 to index
    %c0_63 = arith.constant 0 : index
    %c0_64 = arith.constant 0 : index
    %183 = vector.load %arg7[%182, %c0_63, %c0_64] : memref<8x8x512xf32, #tpu.memory_space<vmem>>, vector<1x8x512xf32>
    %184 = vector.shape_cast %183 : vector<1x8x512xf32> to vector<8x512xf32>
    %185 = arith.truncf %176 : vector<8x128xf32> to vector<8x128xbf16>
    %c0_65 = arith.constant 0 : index
    %c0_66 = arith.constant 0 : index
    %186 = vector.load %arg5[%c0_65, %c0_66] : memref<128x512xbf16, #tpu.memory_space<vmem>>, vector<128x512xbf16>
    %cst_67 = arith.constant dense<0.000000e+00> : vector<8x512xf32>
    %187 = tpu.matmul %185, %186, %cst_67 {dimension_numbers = #tpu.dot_dimension_numbers<[1], [0], [0], [1], [0, 0, 1, 1], [], []>} : vector<8x128xbf16>, vector<128x512xbf16>, vector<8x512xf32> -> vector<8x512xf32>
    %188 = arith.addf %184, %187 : vector<8x512xf32>
    %189 = vector.extract_strided_slice %188 {offsets = [0, 0], sizes = [8, 384], strides = [1, 1]} : vector<8x512xf32> to vector<8x384xf32>
    %190 = arith.negf %189 : vector<8x384xf32>
    %191 = math.exp %190 : vector<8x384xf32>
    %cst_68 = arith.constant 1.000000e+00 : f32
    %192 = vector.broadcast %cst_68 : f32 to vector<8x384xf32>
    %193 = arith.addf %192, %191 : vector<8x384xf32>
    %194 = arith.divf %192, %193 : vector<8x384xf32>
    %195 = vector.extract_strided_slice %188 {offsets = [0, 384], sizes = [8, 128], strides = [1, 1]} : vector<8x512xf32> to vector<8x128xf32>
    %196 = math.tanh %195 : vector<8x128xf32>
    %197 = vector.extract_strided_slice %194 {offsets = [0, 0], sizes = [8, 128], strides = [1, 1]} : vector<8x384xf32> to vector<8x128xf32>
    %198 = vector.extract_strided_slice %194 {offsets = [0, 128], sizes = [8, 128], strides = [1, 1]} : vector<8x384xf32> to vector<8x128xf32>
    %199 = vector.extract_strided_slice %194 {offsets = [0, 256], sizes = [8, 128], strides = [1, 1]} : vector<8x384xf32> to vector<8x128xf32>
    %200 = arith.mulf %198, %174 : vector<8x128xf32>
    %201 = arith.mulf %197, %196 : vector<8x128xf32>
    %202 = arith.addf %200, %201 : vector<8x128xf32>
    %203 = math.tanh %202 : vector<8x128xf32>
    %204 = arith.mulf %199, %203 : vector<8x128xf32>
    %205 = arith.truncf %204 : vector<8x128xf32> to vector<8x128xbf16>
    %206 = arith.index_cast %c6_i32 : i32 to index
    %c0_69 = arith.constant 0 : index
    %c0_70 = arith.constant 0 : index
    %207 = vector.load %arg6[%206, %c0_69, %c0_70] : memref<8x8x128xbf16, #tpu.memory_space<vmem>>, vector<1x8x128xbf16>
    %208 = vector.shape_cast %207 : vector<1x8x128xbf16> to vector<8x128xbf16>
    %209 = vector.shape_cast %205 : vector<8x128xbf16> to vector<1x8x128xbf16>
    tpu.vector_store %arg6[%206, %c0_69, %c0_70], %209 {strides = array<i32>} : memref<8x8x128xbf16, #tpu.memory_space<vmem>>, vector<1x8x128xbf16>,
    %c7_i32 = arith.constant 7 : i32
    %210 = arith.index_cast %c7_i32 : i32 to index
    %c0_71 = arith.constant 0 : index
    %c0_72 = arith.constant 0 : index
    %211 = vector.load %arg7[%210, %c0_71, %c0_72] : memref<8x8x512xf32, #tpu.memory_space<vmem>>, vector<1x8x512xf32>
    %212 = vector.shape_cast %211 : vector<1x8x512xf32> to vector<8x512xf32>
    %213 = arith.truncf %204 : vector<8x128xf32> to vector<8x128xbf16>
    %c0_73 = arith.constant 0 : index
    %c0_74 = arith.constant 0 : index
    %214 = vector.load %arg5[%c0_73, %c0_74] : memref<128x512xbf16, #tpu.memory_space<vmem>>, vector<128x512xbf16>
    %cst_75 = arith.constant dense<0.000000e+00> : vector<8x512xf32>
    %215 = tpu.matmul %213, %214, %cst_75 {dimension_numbers = #tpu.dot_dimension_numbers<[1], [0], [0], [1], [0, 0, 1, 1], [], []>} : vector<8x128xbf16>, vector<128x512xbf16>, vector<8x512xf32> -> vector<8x512xf32>
    %216 = arith.addf %212, %215 : vector<8x512xf32>
    %217 = vector.extract_strided_slice %216 {offsets = [0, 0], sizes = [8, 384], strides = [1, 1]} : vector<8x512xf32> to vector<8x384xf32>
    %218 = arith.negf %217 : vector<8x384xf32>
    %219 = math.exp %218 : vector<8x384xf32>
    %cst_76 = arith.constant 1.000000e+00 : f32
    %220 = vector.broadcast %cst_76 : f32 to vector<8x384xf32>
    %221 = arith.addf %220, %219 : vector<8x384xf32>
    %222 = arith.divf %220, %221 : vector<8x384xf32>
    %223 = vector.extract_strided_slice %216 {offsets = [0, 384], sizes = [8, 128], strides = [1, 1]} : vector<8x512xf32> to vector<8x128xf32>
    %224 = math.tanh %223 : vector<8x128xf32>
    %225 = vector.extract_strided_slice %222 {offsets = [0, 0], sizes = [8, 128], strides = [1, 1]} : vector<8x384xf32> to vector<8x128xf32>
    %226 = vector.extract_strided_slice %222 {offsets = [0, 128], sizes = [8, 128], strides = [1, 1]} : vector<8x384xf32> to vector<8x128xf32>
    %227 = vector.extract_strided_slice %222 {offsets = [0, 256], sizes = [8, 128], strides = [1, 1]} : vector<8x384xf32> to vector<8x128xf32>
    %228 = arith.mulf %226, %202 : vector<8x128xf32>
    %229 = arith.mulf %225, %224 : vector<8x128xf32>
    %230 = arith.addf %228, %229 : vector<8x128xf32>
    %231 = math.tanh %230 : vector<8x128xf32>
    %232 = arith.mulf %227, %231 : vector<8x128xf32>
    %233 = arith.truncf %232 : vector<8x128xf32> to vector<8x128xbf16>
    %234 = arith.index_cast %c7_i32 : i32 to index
    %c0_77 = arith.constant 0 : index
    %c0_78 = arith.constant 0 : index
    %235 = vector.load %arg6[%234, %c0_77, %c0_78] : memref<8x8x128xbf16, #tpu.memory_space<vmem>>, vector<1x8x128xbf16>
    %236 = vector.shape_cast %235 : vector<1x8x128xbf16> to vector<8x128xbf16>
    %237 = vector.shape_cast %233 : vector<8x128xbf16> to vector<1x8x128xbf16>
    tpu.vector_store %arg6[%234, %c0_77, %c0_78], %237 {strides = array<i32>} : memref<8x8x128xbf16, #tpu.memory_space<vmem>>, vector<1x8x128xbf16>,
    %c8_i32 = arith.constant 8 : i32
    %c0_79 = arith.constant 0 : index
    %c0_80 = arith.constant 0 : index
    %238 = vector.load %arg8[%c0_79, %c0_80] : memref<8x128xf32, #tpu.memory_space<vmem>>, vector<8x128xf32>
    tpu.vector_store %arg8[%c0_79, %c0_80], %232 {strides = array<i32>} : memref<8x128xf32, #tpu.memory_space<vmem>>, vector<8x128xf32>,
    %c0_81 = arith.constant 0 : index
    %c0_82 = arith.constant 0 : index
    %239 = vector.load %arg9[%c0_81, %c0_82] : memref<8x128xf32, #tpu.memory_space<vmem>>, vector<8x128xf32>
    tpu.vector_store %arg9[%c0_81, %c0_82], %230 {strides = array<i32>} : memref<8x128xf32, #tpu.memory_space<vmem>>, vector<8x128xf32>,
    return
  }
  func.func @transform_0(%arg0: i32, %arg1: i32) -> (i32, i32, i32) {
    %c0_i32 = arith.constant 0 : i32
    %c0_i32_0 = arith.constant 0 : i32
    return %arg1, %arg0, %c0_i32 : i32, i32, i32
  }
  func.func @transform_1(%arg0: i32, %arg1: i32) -> (i32, i32) {
    %c0_i32 = arith.constant 0 : i32
    %c0_i32_0 = arith.constant 0 : i32
    %c0_i32_1 = arith.constant 0 : i32
    return %c0_i32, %c0_i32_0 : i32, i32
  }
  func.func @transform_2(%arg0: i32, %arg1: i32) -> (i32, i32) {
    %c0_i32 = arith.constant 0 : i32
    %c0_i32_0 = arith.constant 0 : i32
    %c0_i32_1 = arith.constant 0 : i32
    return %c0_i32, %c0_i32_0 : i32, i32
  }
  func.func @transform_3(%arg0: i32, %arg1: i32) -> (i32, i32) {
    %c0_i32 = arith.constant 0 : i32
    %c0_i32_0 = arith.constant 0 : i32
    %c0_i32_1 = arith.constant 0 : i32
    return %c0_i32, %c0_i32_0 : i32, i32
  }
  func.func @transform_4(%arg0: i32, %arg1: i32) -> (i32, i32, i32) {
    %c0_i32 = arith.constant 0 : i32
    %c0_i32_0 = arith.constant 0 : i32
    return %arg1, %arg0, %c0_i32 : i32, i32, i32
  }
}

</mosaic_0001>

<bundles_post_ra>
// kernel: tpu_custom_call.1
= control target key start
LH: loop header
LB: loop body
LE: loop exit
PB: predicated region body
PF: predicated region fallthrough
CT: control target
= control target key end

     0   :  { %9 = vsyncpa [#allocation6], 0  ;;  %s4327_s0 = inlined_call_operand.hbm [shape: bf16[8,8,128], index: 0, kind: input, shape index: {}]   ;;  %s4328_s1 = inlined_call_operand.hbm [shape: bf16[128,512], index: 1, kind: input, shape index: {}]   ;;  %s4329_s2 = inlined_call_operand.vmem [shape: f32[1,512], index: 2, kind: input, shape index: {}]   ;;  %s4330_s3 = inlined_call_operand.hbm [shape: bf16[128,512], index: 3, kind: input, shape index: {}]   ;;  %s4331_s4 = inlined_call_operand.hbm [shape: bf16[8,8,128], index: 4, kind: output, shape index: {}]  }
   0x1   :  { %10 = vsyncpa [#allocation9], 0 }
   0x2   :  { %11 = vsyncpa [#allocation7], 0  ;;  %s3687_s15 = smov [#allocation8]   ;;  %s3593_s19 = scalar_lea.hbm %s4328_s1, 4096 }
   0x3   :  { %s29_s16 = sshll.u32 %s3687_s15, 4  ;;  %p3594_p0 = scmp.ne.s32.totalorder %s4328_s1, %s3593_s19  ;;  %s30_s16 = int_to_ptr.vmem [resolvable:$true] %s29_s16 }
   0x4   :  { %p3597_p1 = scmp.lt.u32.totalorder %s3593_s19, %s4328_s1 }
   0x6   :  { %p3599_p2 = pnand %p3597_p1, %p3594_p0 }
   0x8   :  { %3602 = shalt.err (!%p3599_p2)
}
   0x9   :  { %s3603_s24 = scalar_lea.vmem %s30_s16, 4096  ;;  %p3608_p4 = scmp.lt.s32.totalorder %s30_s16, %s30_s16 }
   0xa   :  { %p3604_p3 = scmp.ne.s32.totalorder %s30_s16, %s3603_s24  ;;  %p3609_p5 = scmp.lt.s32.totalorder %s3603_s24, %s3603_s24 }
   0xc   :  { %p3610_p6 = por %p3609_p5, %p3608_p4 }
   0xe   :  { %p3611_p7 = pnand %p3610_p6, %p3604_p3 }
  0x10   :  { %3614 = shalt.err (!%p3611_p7)
}
  0x11   :  { %s3688_s25 = smov 256   ;;  %s3689_s26 = smov 16  }
  0x12   :  { %35 = dma.hbm_to_vmem [thread:$0]  %s4328_s1, 4096, %s30_s16, [#allocation9], %s3688_s25, %s3688_s25, %s3689_s26  }
  0x13   :  { %s3690_s29 = smov [#allocation5]   ;;  %s3615_s7 = scalar_lea.hbm %s4327_s0, 512 }
  0x14   :  { %s17_s30 = sshll.u32 %s3690_s29, 4  ;;  %p3616_p8 = scmp.ne.s32.totalorder %s4327_s0, %s3615_s7  ;;  %s18_s30 = int_to_ptr.vmem [resolvable:$true] %s17_s30 }
  0x15   :  { %p3619_p9 = scmp.lt.u32.totalorder %s3615_s7, %s4327_s0 }
  0x17   :  { %p3621_p10 = pnand %p3619_p9, %p3616_p8 }
  0x19   :  { %3624 = shalt.err (!%p3621_p10)
}
  0x1a   :  { %s3625_s12 = scalar_lea.vmem %s18_s30, 512  ;;  %p3630_p12 = scmp.lt.s32.totalorder %s18_s30, %s18_s30 }
  0x1b   :  { %p3626_p11 = scmp.ne.s32.totalorder %s18_s30, %s3625_s12  ;;  %p3631_p13 = scmp.lt.s32.totalorder %s3625_s12, %s3625_s12 }
  0x1d   :  { %p3632_p0 = por %p3631_p13, %p3630_p12 }
  0x1f   :  { %p3633_p1 = pnand %p3632_p0, %p3626_p11 }
  0x21   :  { %3636 = shalt.err (!%p3633_p1)
}
  0x22   :  { %s3691_s1 = smov 64   ;;  %s3692_s13 = smov 4  }
  0x23   :  { %23 = dma.hbm_to_vmem [thread:$0]  %s4327_s0, 512, %s18_s30, [#allocation6], %s3691_s1, %s3691_s1, %s3692_s13  }
  0x24   :  { %s3693_s16 = smov [#allocation10]   ;;  %s3637_s20 = scalar_lea.hbm %s4330_s3, 4096 }
  0x25   :  { %s43_s17 = sshll.u32 %s3693_s16, 4  ;;  %p3638_p2 = scmp.ne.s32.totalorder %s4330_s3, %s3637_s20  ;;  %s44_s17 = int_to_ptr.vmem [resolvable:$true] %s43_s17 }
  0x26   :  { %p3641_p3 = scmp.lt.u32.totalorder %s3637_s20, %s4330_s3 }
  0x28   :  { %p3643_p4 = pnand %p3641_p3, %p3638_p2 }
  0x2a   :  { %3646 = shalt.err (!%p3643_p4)
}
  0x2b   :  { %s3647_s27 = scalar_lea.vmem %s44_s17, 4096  ;;  %p3652_p6 = scmp.lt.s32.totalorder %s44_s17, %s44_s17 }
  0x2c   :  { %p3648_p5 = scmp.ne.s32.totalorder %s44_s17, %s3647_s27  ;;  %p3653_p7 = scmp.lt.s32.totalorder %s3647_s27, %s3647_s27 }
  0x2e   :  { %p3654_p8 = por %p3653_p7, %p3652_p6 }
  0x30   :  { %p3655_p9 = pnand %p3654_p8, %p3648_p5 }
  0x32   :  { %3658 = shalt.err (!%p3655_p9)
}
  0x33   :  { %49 = dma.hbm_to_vmem [thread:$0]  %s4330_s3, 4096, %s44_s17, [#allocation9], %s3688_s25, %s3688_s25, %s3689_s26  }
  0x34   :  { %3681 = dma.done.wait [#allocation6], 512  }
  0x35   :  { %3682 = vsyncadd [#allocation6], 4294966784 }
  0x36   :  { %3683 = dma.done.wait [#allocation9], 8192  }
  0x37   :  { %3684 = vsyncadd [#allocation9], 4294959104  ;;  %v4332_v0 = vmov 0   ;;  %v3317_v1 = vld [vmem:[#allocation8 + $0x4] ss:$16 sps:$4 sm:$0xff]   ;;  %v3378_v44 = vld [vmem:[#allocation5 + $0x8] sm:$0xff]  }
  0x38   :  { %344 = vmatprep.mubr.bf16.mxu0 %v4332_v0  ;;  %417 = vmatprep.mubr.bf16.mxu1 %v4332_v0  ;;  %v3319_v2 = vld [vmem:[#allocation8 + $0xc] ss:$16 sps:$4 sm:$0xff]   ;;  %v3321_v3 = vld [vmem:[#allocation8] ss:$16 sps:$4 sm:$0xff]   ;;  %v3322_v4 = vld [vmem:[#allocation8 + $0x8] ss:$16 sps:$4 sm:$0xff]  }
  0x39   :  { %312 = vmatprep.subr.bf16.mxu0 %v3317_v1  ;;  %385 = vmatprep.subr.bf16.mxu1 %v3319_v2  ;;  %v3323_v5 = vld [vmem:[#allocation8 + $0x24] ss:$16 sps:$4 sm:$0xff]   ;;  %v3325_v6 = vld [vmem:[#allocation8 + $0x2c] ss:$16 sps:$4 sm:$0xff]   ;;  %v3327_v7 = vld [vmem:[#allocation8 + $0x20] ss:$16 sps:$4 sm:$0xff]  }
  0x3a   :  { %313 = vmatpush1.bf16.msra.mxu0 %v3321_v3  ;;  %386 = vmatpush1.bf16.msra.mxu1 %v3322_v4  ;;  %v3328_v8 = vld [vmem:[#allocation8 + $0x28] ss:$16 sps:$4 sm:$0xff]   ;;  %v3329_v9 = vld [vmem:[#allocation8 + $0x44] ss:$16 sps:$4 sm:$0xff]   ;;  %v3331_v10 = vld [vmem:[#allocation8 + $0x4c] ss:$16 sps:$4 sm:$0xff]  }
  0x3b   :  { %314 = vmatprep.subr.bf16.mxu0 %v3323_v5  ;;  %387 = vmatprep.subr.bf16.mxu1 %v3325_v6  ;;  %v3333_v11 = vld [vmem:[#allocation8 + $0x40] ss:$16 sps:$4 sm:$0xff]   ;;  %v3334_v12 = vld [vmem:[#allocation8 + $0x48] ss:$16 sps:$4 sm:$0xff]   ;;  %v3335_v13 = vld [vmem:[#allocation8 + $0x64] ss:$16 sps:$4 sm:$0xff]  }
  0x3c   :  { %v3337_v14 = vld [vmem:[#allocation8 + $0x6c] ss:$16 sps:$4 sm:$0xff]   ;;  %v3339_v15 = vld [vmem:[#allocation8 + $0x60] ss:$16 sps:$4 sm:$0xff]   ;;  %v3340_v16 = vld [vmem:[#allocation8 + $0x68] ss:$16 sps:$4 sm:$0xff]  }
  0x3d   :  { %v3341_v17 = vld [vmem:[#allocation8 + $0x84] ss:$16 sps:$4 sm:$0xff]   ;;  %v3343_v18 = vld [vmem:[#allocation8 + $0x8c] ss:$16 sps:$4 sm:$0xff]   ;;  %v3345_v19 = vld [vmem:[#allocation8 + $0x80] ss:$16 sps:$4 sm:$0xff]  }
  0x3e   :  { %315 = vmatpush1.bf16.msra.mxu0 %v3327_v7  ;;  %388 = vmatpush1.bf16.msra.mxu1 %v3328_v8  ;;  %v3346_v20 = vld [vmem:[#allocation8 + $0x88] ss:$16 sps:$4 sm:$0xff]   ;;  %v3347_v21 = vld [vmem:[#allocation8 + $0xa4] ss:$16 sps:$4 sm:$0xff]   ;;  %v3349_v22 = vld [vmem:[#allocation8 + $0xac] ss:$16 sps:$4 sm:$0xff]   ;;  %v108_v7 = vlaneseq }
  0x3f   :  { %316 = vmatprep.subr.bf16.mxu0 %v3329_v9  ;;  %389 = vmatprep.subr.bf16.mxu1 %v3331_v10  ;;  %v3351_v23 = vld [vmem:[#allocation8 + $0xa0] ss:$16 sps:$4 sm:$0xff]   ;;  %v3352_v24 = vld [vmem:[#allocation8 + $0xa8] ss:$16 sps:$4 sm:$0xff]   ;;  %v3353_v25 = vld [vmem:[#allocation8 + $0xc4] ss:$16 sps:$4 sm:$0xff]  }
  0x40   :  { %v3355_v26 = vld [vmem:[#allocation8 + $0xcc] ss:$16 sps:$4 sm:$0xff]   ;;  %v3357_v27 = vld [vmem:[#allocation8 + $0xc0] ss:$16 sps:$4 sm:$0xff]   ;;  %v3358_v28 = vld [vmem:[#allocation8 + $0xc8] ss:$16 sps:$4 sm:$0xff]  }
  0x41   :  { %v3359_v29 = vld [vmem:[#allocation8 + $0xe4] ss:$16 sps:$4 sm:$0xff]   ;;  %v3361_v30 = vld [vmem:[#allocation8 + $0xec] ss:$16 sps:$4 sm:$0xff]   ;;  %v3363_v31 = vld [vmem:[#allocation8 + $0xe0] ss:$16 sps:$4 sm:$0xff]  }
  0x42   :  { %317 = vmatpush1.bf16.msra.mxu0 %v3333_v11  ;;  %390 = vmatpush1.bf16.msra.mxu1 %v3334_v12  ;;  %v3364_v32 = vld [vmem:[#allocation8 + $0xe8] ss:$16 sps:$4 sm:$0xff]   ;;  %v3769_v33 = vld [vmem:[#allocation10 + $0x4] ss:$16 sps:$4 sm:$0xff]   ;;  %v3771_v34 = vld [vmem:[#allocation10 + $0xc] ss:$16 sps:$4 sm:$0xff]  }
  0x43   :  { %318 = vmatprep.subr.bf16.mxu0 %v3335_v13  ;;  %391 = vmatprep.subr.bf16.mxu1 %v3337_v14  ;;  %v3365_v35 = vld [vmem:[#allocation5] sm:$0xff]   ;;  %v3775_v37 = vld [vmem:[#allocation10 + $0x8] ss:$16 sps:$4 sm:$0xff]   ;;  %v3781_v39 = vld [vmem:[#allocation10 + $0x2c] ss:$16 sps:$4 sm:$0xff]   ;;  %v3695_v6 = vmov 0.0|0.0  }
  0x44   :  { %v3773_v36 = vld [vmem:[#allocation10] ss:$16 sps:$4 sm:$0xff]   ;;  %v3779_v38 = vld [vmem:[#allocation10 + $0x24] ss:$16 sps:$4 sm:$0xff]   ;;  %v3787_v41 = vld [vmem:[#allocation10 + $0x28] ss:$16 sps:$4 sm:$0xff]  }
  0x45   :  { %v3783_v40 = vld [vmem:[#allocation10 + $0x20] ss:$16 sps:$4 sm:$0xff]   ;;  %v3791_v42 = vld [vmem:[#allocation10 + $0x44] ss:$16 sps:$4 sm:$0xff]   ;;  %v3793_v43 = vld [vmem:[#allocation10 + $0x4c] ss:$16 sps:$4 sm:$0xff]  }
  0x46   :  { %319 = vmatpush1.bf16.msra.mxu0 %v3339_v15  ;;  %392 = vmatpush1.bf16.msra.mxu1 %v3340_v16  ;;  %v3797_v45 = vld [vmem:[#allocation10 + $0x40] ss:$16 sps:$4 sm:$0xff]   ;;  %v3799_v46 = vld [vmem:[#allocation10 + $0x48] ss:$16 sps:$4 sm:$0xff]   ;;  %v3803_v47 = vld [vmem:[#allocation10 + $0x64] ss:$16 sps:$4 sm:$0xff]  }
  0x47   :  { %320 = vmatprep.subr.bf16.mxu0 %v3341_v17  ;;  %393 = vmatprep.subr.bf16.mxu1 %v3343_v18  ;;  %v3807_v48 = vld [vmem:[#allocation10 + $0x6c] ss:$16 sps:$4 sm:$0xff]   ;;  %v3809_v49 = vld [vmem:[#allocation10 + $0x60] ss:$16 sps:$4 sm:$0xff]   ;;  %v3811_v50 = vld [vmem:[#allocation10 + $0x68] ss:$16 sps:$4 sm:$0xff]  }
  0x48   :  { %v3815_v51 = vld [vmem:[#allocation10 + $0x84] ss:$16 sps:$4 sm:$0xff]   ;;  %v3819_v52 = vld [vmem:[#allocation10 + $0x8c] ss:$16 sps:$4 sm:$0xff]   ;;  %v3823_v54 = vld [vmem:[#allocation10 + $0x80] ss:$16 sps:$4 sm:$0xff]  }
  0x49   :  { %v3391_v53 = vld [vmem:[#allocation5 + $0x10] sm:$0xff]   ;;  %v3825_v55 = vld [vmem:[#allocation10 + $0x88] ss:$16 sps:$4 sm:$0xff]   ;;  %v3829_v57 = vld [vmem:[#allocation10 + $0xac] ss:$16 sps:$4 sm:$0xff]   ;;  %v109_v8 = vshrl.u32 %v108_v7, 7 }
  0x4a   :  { %321 = vmatpush1.bf16.msra.mxu0 %v3345_v19  ;;  %394 = vmatpush1.bf16.msra.mxu1 %v3346_v20  ;;  %v3827_v56 = vld [vmem:[#allocation10 + $0xa4] ss:$16 sps:$4 sm:$0xff]   ;;  %v3835_v58 = vld [vmem:[#allocation10 + $0xa0] ss:$16 sps:$4 sm:$0xff]   ;;  %v3837_v59 = vld [vmem:[#allocation10 + $0xa8] ss:$16 sps:$4 sm:$0xff]  }
  0x4b   :  { %322 = vmatprep.subr.bf16.mxu0 %v3347_v21  ;;  %395 = vmatprep.subr.bf16.mxu1 %v3349_v22  ;;  %v3839_v60 = vld [vmem:[#allocation10 + $0xc4] ss:$16 sps:$4 sm:$0xff]   ;;  %v3841_v61 = vld [vmem:[#allocation10 + $0xcc] ss:$16 sps:$4 sm:$0xff]   ;;  %v3849_v63 = vld [vmem:[#allocation10 + $0xc0] ss:$16 sps:$4 sm:$0xff]  }
  0x4c   :  { %v3404_v62 = vld [vmem:[#allocation5 + $0x18] sm:$0xff]   ;;  %v3853_v2 = vld [vmem:[#allocation10 + $0xe4] ss:$16 sps:$4 sm:$0xff]   ;;  %v3863_v4 = vld [vmem:[#allocation10 + $0xe0] ss:$16 sps:$4 sm:$0xff]   ;;  %v118_v9 = vsub.s32 2, %v109_v8 }
  0x4d   :  { %v3851_v1 = vld [vmem:[#allocation10 + $0xc8] ss:$16 sps:$4 sm:$0xff]   ;;  %v3859_v3 = vld [vmem:[#allocation10 + $0xec] ss:$16 sps:$4 sm:$0xff]   ;;  %v122_v10 = vsub.s32 3, %v109_v8  ;;  %v110_v11 = vsub.s32 0, %v109_v8 }
  0x4e   :  { %323 = vmatpush1.bf16.msra.mxu0 %v3351_v23  ;;  %396 = vmatpush1.bf16.msra.mxu1 %v3352_v24  ;;  %v3865_v5 = vld [vmem:[#allocation10 + $0xe8] ss:$16 sps:$4 sm:$0xff]   ;;  %v106_v12 = vld [vmem:[%s4329_s2] sm:$0xf]  ;;  %v114_v13 = vsub.s32 1, %v109_v8  ;;  %s3696_s2 = smov [#allocation11]  }
  0x4f   :  { %324 = vmatprep.subr.bf16.mxu0 %v3353_v25  ;;  %397 = vmatprep.subr.bf16.mxu1 %v3355_v26  ;;  %v3912_v14 = vrot.slane %v106_v12, %v118_v9  ;;  %v3918_v17 = vrot.slane %v106_v12, %v122_v10  ;;  %v111_v18 = vrot.slane %v106_v12, %v110_v11  ;;  %s2978_s26 = sshll.u32 %s3696_s2, 4  ;;  %s2979_s26 = int_to_ptr.vmem [resolvable:$true] %s2978_s26 }
  0x50   :  { %v115_v21 = vrot.slane %v106_v12, %v114_v13  ;;  %s3659_s29 = scalar_lea.vmem %s2979_s26, 512  ;;  %p3664_p11 = scmp.lt.s32.totalorder %s2979_s26, %s2979_s26 }
  0x51   :  { %p3660_p10 = scmp.ne.s32.totalorder %s2979_s26, %s3659_s29  ;;  %p3665_p12 = scmp.lt.s32.totalorder %s3659_s29, %s3659_s29 }
  0x52   :  { %325 = vmatpush1.bf16.msra.mxu0 %v3357_v27  ;;  %398 = vmatpush1.bf16.msra.mxu1 %v3358_v28 }
  0x53   :  { %326 = vmatprep.subr.bf16.mxu0 %v3359_v29  ;;  %399 = vmatprep.subr.bf16.mxu1 %v3361_v30  ;;  %p3666_p13 = por %p3665_p12, %p3664_p11 }
  0x55   :  { %p3667_p0 = pnand %p3666_p13, %p3660_p10 }
  0x56   :  { %327 = vmatpush1.bf16.msra.mxu0 %v3363_v31  ;;  %400 = vmatpush1.bf16.msra.mxu1 %v3364_v32 }
  0x57   :  { %689 = vmatprep.subr.bf16.mxu0 %v3769_v33  ;;  %730 = vmatprep.subr.bf16.mxu1 %v3771_v34 }
  0x59   :  { %345 = vmatmul.mubr.bf16.vlgmr.msra.gmra.mrb[0].mxu0 %v3365_v35  ;;  %418 = vmatmul.mubr.bf16.vlgmr.msra.gmra.mrb[0].mxu1 %v3365_v35 }
  0x5a   :  { %690 = vmatpush1.bf16.msra.mxu0 %v3773_v36  ;;  %731 = vmatpush1.bf16.msra.mxu1 %v3775_v37 }
  0x5b   :  { %691 = vmatprep.subr.bf16.mxu0 %v3779_v38  ;;  %732 = vmatprep.subr.bf16.mxu1 %v3781_v39 }
  0x5c   :  { %354 = vmatprep.mubr.bf16.mxu0 %v4332_v0  ;;  %427 = vmatprep.mubr.bf16.mxu1 %v4332_v0 }
  0x5e   :  { %692 = vmatpush1.bf16.msra.mxu0 %v3783_v40  ;;  %733 = vmatpush1.bf16.msra.mxu1 %v3787_v41 }
  0x5f   :  { %693 = vmatprep.subr.bf16.mxu0 %v3791_v42  ;;  %734 = vmatprep.subr.bf16.mxu1 %v3793_v43 }
  0x61   :  { %355 = vmatmul.mubr.bf16.gmra.mrb[4].mxu0 %v3378_v44  ;;  %428 = vmatmul.mubr.bf16.gmra.mrb[4].mxu1 %v3378_v44 }
  0x62   :  { %694 = vmatpush1.bf16.msra.mxu0 %v3797_v45  ;;  %735 = vmatpush1.bf16.msra.mxu1 %v3799_v46 }
  0x63   :  { %695 = vmatprep.subr.bf16.mxu0 %v3803_v47  ;;  %736 = vmatprep.subr.bf16.mxu1 %v3807_v48 }
  0x64   :  { %364 = vmatprep.mubr.bf16.mxu0 %v4332_v0  ;;  %437 = vmatprep.mubr.bf16.mxu1 %v4332_v0 }
  0x66   :  { %696 = vmatpush1.bf16.msra.mxu0 %v3809_v49  ;;  %737 = vmatpush1.bf16.msra.mxu1 %v3811_v50 }
  0x67   :  { %697 = vmatprep.subr.bf16.mxu0 %v3815_v51  ;;  %738 = vmatprep.subr.bf16.mxu1 %v3819_v52 }
  0x69   :  { %365 = vmatmul.mubr.bf16.gmra.mrb[8].mxu0 %v3391_v53  ;;  %438 = vmatmul.mubr.bf16.gmra.mrb[8].mxu1 %v3391_v53 }
  0x6a   :  { %698 = vmatpush1.bf16.msra.mxu0 %v3823_v54  ;;  %739 = vmatpush1.bf16.msra.mxu1 %v3825_v55 }
  0x6b   :  { %699 = vmatprep.subr.bf16.mxu0 %v3827_v56  ;;  %740 = vmatprep.subr.bf16.mxu1 %v3829_v57 }
  0x6c   :  { %374 = vmatprep.mubr.bf16.mxu0 %v4332_v0  ;;  %447 = vmatprep.mubr.bf16.mxu1 %v4332_v0 }
  0x6e   :  { %700 = vmatpush1.bf16.msra.mxu0 %v3835_v58  ;;  %741 = vmatpush1.bf16.msra.mxu1 %v3837_v59 }
  0x6f   :  { %701 = vmatprep.subr.bf16.mxu0 %v3839_v60  ;;  %742 = vmatprep.subr.bf16.mxu1 %v3841_v61 }
  0x71   :  { %375 = vmatmul.mubr.bf16.gmra.mrb[12].mxu0 %v3404_v62  ;;  %448 = vmatmul.mubr.bf16.gmra.mrb[12].mxu1 %v3404_v62 }
  0x72   :  { %702 = vmatpush1.bf16.msra.mxu0 %v3849_v63  ;;  %743 = vmatpush1.bf16.msra.mxu1 %v3851_v1 }
  0x73   :  { %703 = vmatprep.subr.bf16.mxu0 %v3853_v2  ;;  %744 = vmatprep.subr.bf16.mxu1 %v3859_v3 }
  0x74   :  { %721 = vmatprep.mubr.bf16.mxu0 %v4332_v0  ;;  %762 = vmatprep.mubr.bf16.mxu1 %v4332_v0 }
  0x76   :  { %704 = vmatpush1.bf16.msra.mxu0 %v3863_v4  ;;  %745 = vmatpush1.bf16.msra.mxu1 %v3865_v5 }
  0x77   :  { %998 = vmatprep.subr.bf16.mxu0 %v3769_v33  ;;  %1039 = vmatprep.subr.bf16.mxu1 %v3771_v34 }
  0x79   :  { %722 = vmatmul.mubr.bf16.vlgmr.msra.gmra.mrb[16].mxu0 %v3695_v6  ;;  %763 = vmatmul.mubr.bf16.vlgmr.msra.gmra.mrb[16].mxu1 %v3695_v6 }
  0x7a   :  { %999 = vmatpush1.bf16.msra.mxu0 %v3773_v36  ;;  %1040 = vmatpush1.bf16.msra.mxu1 %v3775_v37 }
  0x7b   :  { %1000 = vmatprep.subr.bf16.mxu0 %v3779_v38  ;;  %1041 = vmatprep.subr.bf16.mxu1 %v3781_v39 }
  0x7c   :  { %1030 = vmatprep.mubr.bf16.mxu0 %v4332_v0  ;;  %1071 = vmatprep.mubr.bf16.mxu1 %v4332_v0 }
  0x7e   :  { %1001 = vmatpush1.bf16.msra.mxu0 %v3783_v40  ;;  %1042 = vmatpush1.bf16.msra.mxu1 %v3787_v41 }
  0x7f   :  { %1002 = vmatprep.subr.bf16.mxu0 %v3791_v42  ;;  %1043 = vmatprep.subr.bf16.mxu1 %v3793_v43 }
  0x82   :  { %1003 = vmatpush1.bf16.msra.mxu0 %v3797_v45  ;;  %1044 = vmatpush1.bf16.msra.mxu1 %v3799_v46 }
  0x83   :  { %1004 = vmatprep.subr.bf16.mxu0 %v3803_v47  ;;  %1045 = vmatprep.subr.bf16.mxu1 %v3807_v48 }
  0x86   :  { %1005 = vmatpush1.bf16.msra.mxu0 %v3809_v49  ;;  %1046 = vmatpush1.bf16.msra.mxu1 %v3811_v50 }
  0x87   :  { %1006 = vmatprep.subr.bf16.mxu0 %v3815_v51  ;;  %1047 = vmatprep.subr.bf16.mxu1 %v3819_v52 }
  0x8a   :  { %1007 = vmatpush1.bf16.msra.mxu0 %v3823_v54  ;;  %1048 = vmatpush1.bf16.msra.mxu1 %v3825_v55 }
  0x8b   :  { %1008 = vmatprep.subr.bf16.mxu0 %v3827_v56  ;;  %1049 = vmatprep.subr.bf16.mxu1 %v3829_v57 }
  0x8e   :  { %1009 = vmatpush1.bf16.msra.mxu0 %v3835_v58  ;;  %1050 = vmatpush1.bf16.msra.mxu1 %v3837_v59 }
  0x8f   :  { %1010 = vmatprep.subr.bf16.mxu0 %v3839_v60  ;;  %1051 = vmatprep.subr.bf16.mxu1 %v3841_v61 }
  0x92   :  { %1011 = vmatpush1.bf16.msra.mxu0 %v3849_v63  ;;  %1052 = vmatpush1.bf16.msra.mxu1 %v3851_v1 }
  0x93   :  { %1012 = vmatprep.subr.bf16.mxu0 %v3853_v2  ;;  %1053 = vmatprep.subr.bf16.mxu1 %v3859_v3 }
  0x96   :  { %1013 = vmatpush1.bf16.msra.mxu0 %v3863_v4  ;;  %1054 = vmatpush1.bf16.msra.mxu1 %v3865_v5 }
  0x97   :  { %1308 = vmatprep.subr.bf16.mxu0 %v3769_v33  ;;  %1349 = vmatprep.subr.bf16.mxu1 %v3771_v34 }
 0x12c   :  { %v3914_v15 = vpop.f32.mrb[0].mxu0  ;;  %v3916_v16 = vpop.f32.mrb[0].mxu1 }
 0x12d   :  { %v348_v19 = vpop.f32.mrb[1].mxu0  ;;  %v421_v20 = vpop.f32.mrb[1].mxu1 }
 0x12e   :  { %v350_v22 = vpop.f32.mrb[2].mxu0  ;;  %v423_v23 = vpop.f32.mrb[2].mxu1 }
 0x12f   :  { %v3920_v24 = vadd.f32 %v350_v22, %v111_v18  ;;  %v352_v25 = vpop.f32.mrb[3].mxu0  ;;  %v3923_v26 = vadd.f32 %v423_v23, %v3912_v14  ;;  %v425_v27 = vpop.f32.mrb[3].mxu1 }
 0x130   :  { %v3925_v28 = vadd.f32 %v352_v25, %v115_v21  ;;  %v3928_v29 = vadd.f32 %v425_v27, %v3918_v17 }
 0x134   :  { %v356_v30 = vpop.f32.mrb[4].mxu0  ;;  %v429_v31 = vpop.f32.mrb[4].mxu1 }
 0x135   :  { %v3930_v32 = vadd.f32 %v356_v30, %v111_v18  ;;  %v358_v35 = vpop.f32.mrb[5].mxu0  ;;  %v3933_v44 = vadd.f32 %v429_v31, %v3912_v14  ;;  %v431_v53 = vpop.f32.mrb[5].mxu1 }
 0x136   :  { %v3935_v62 = vadd.f32 %v358_v35, %v115_v21  ;;  %v360_v6 = vpop.f32.mrb[6].mxu0  ;;  %v3938_v7 = vadd.f32 %v431_v53, %v3918_v17  ;;  %v433_v8 = vpop.f32.mrb[6].mxu1 }
 0x137   :  { %v3940_v9 = vadd.f32 %v360_v6, %v111_v18  ;;  %v362_v10 = vpop.f32.mrb[7].mxu0  ;;  %v3943_v11 = vadd.f32 %v433_v8, %v3912_v14  ;;  %v435_v12 = vpop.f32.mrb[7].mxu1 }
 0x138   :  { %4334 = vst [vmem:[#allocation15_spill] sm:$0xff] %v3938_v7  ;;  %v3945_v13 = vadd.f32 %v362_v10, %v115_v21  ;;  %v3948_v22 = vadd.f32 %v435_v12, %v3918_v17 }
 0x139   :  { %4335 = vst [vmem:[#allocation16_spill] sm:$0xff] %v3940_v9  ;;  %4336 = vst [vmem:[#allocation17_spill] sm:$0xff] %v3943_v11 }
 0x13a   :  { %4337 = vst [vmem:[#allocation18_spill] sm:$0xff] %v3945_v13  ;;  %4338 = vst [vmem:[#allocation19_spill] sm:$0xff] %v3948_v22 }
 0x13c   :  { %v366_v23 = vpop.f32.mrb[8].mxu0  ;;  %v439_v25 = vpop.f32.mrb[8].mxu1 }
 0x13d   :  { %v3950_v27 = vadd.f32 %v366_v23, %v111_v18  ;;  %v368_v30 = vpop.f32.mrb[9].mxu0  ;;  %v3953_v31 = vadd.f32 %v439_v25, %v3912_v14  ;;  %v441_v35 = vpop.f32.mrb[9].mxu1 }
 0x13e   :  { %v3955_v53 = vadd.f32 %v368_v30, %v115_v21  ;;  %v370_v6 = vpop.f32.mrb[10].mxu0  ;;  %v3958_v8 = vadd.f32 %v441_v35, %v3918_v17  ;;  %v443_v10 = vpop.f32.mrb[10].mxu1 }
 0x13f   :  { %4339 = vst [vmem:[#allocation20_spill] sm:$0xff] %v3950_v27  ;;  %4340 = vst [vmem:[#allocation21_spill] sm:$0xff] %v3953_v31  ;;  %v3960_v0 = vadd.f32 %v370_v6, %v111_v18  ;;  %v372_v12 = vpop.f32.mrb[11].mxu0  ;;  %v3963_v22 = vadd.f32 %v443_v10, %v3912_v14  ;;  %v445_v23 = vpop.f32.mrb[11].mxu1 }
 0x140   :  { %4341 = vst [vmem:[#allocation22_spill] sm:$0xff] %v3955_v53  ;;  %4342 = vst [vmem:[#allocation23_spill] sm:$0xff] %v3958_v8  ;;  %v3965_v27 = vadd.f32 %v372_v12, %v115_v21  ;;  %v3968_v25 = vadd.f32 %v445_v23, %v3918_v17 }
 0x141   :  { %4343 = vst [vmem:[#allocation24_spill] sm:$0xff] %v3960_v0  ;;  %4344 = vst [vmem:[#allocation25_spill] sm:$0xff] %v3963_v22 }
 0x142   :  { %4345 = vst [vmem:[#allocation26_spill] sm:$0xff] %v3965_v27  ;;  %4346 = vst [vmem:[#allocation27_spill] sm:$0xff] %v3968_v25 }
 0x144   :  { %v376_v31 = vpop.f32.mrb[12].mxu0  ;;  %v449_v30 = vpop.f32.mrb[12].mxu1 }
 0x145   :  { %v3970_v53 = vadd.f32 %v376_v31, %v111_v18  ;;  %v378_v13 = vpop.f32.mrb[13].mxu0  ;;  %v3973_v35 = vadd.f32 %v449_v30, %v3912_v14  ;;  %v451_v6 = vpop.f32.mrb[13].mxu1 }
 0x146   :  { %v3975_v0 = vadd.f32 %v378_v13, %v115_v21  ;;  %v380_v8 = vpop.f32.mrb[14].mxu0  ;;  %v3978_v10 = vadd.f32 %v451_v6, %v3918_v17  ;;  %v453_v12 = vpop.f32.mrb[14].mxu1  ;;  %v347_v13 = vadd.f32 %v3914_v15, %v111_v18  ;;  %v349_v6 = vadd.f32 %v348_v19, %v115_v21 }
 0x147   :  { %4347 = vst [vmem:[#allocation28_spill] sm:$0xff] %v3970_v53  ;;  %4348 = vst [vmem:[#allocation29_spill] sm:$0xff] %v3973_v35  ;;  %v3980_v27 = vadd.f32 %v380_v8, %v111_v18  ;;  %v382_v23 = vpop.f32.mrb[15].mxu0  ;;  %v3983_v25 = vadd.f32 %v453_v12, %v3912_v14  ;;  %v455_v31 = vpop.f32.mrb[15].mxu1 }
 0x148   :  { %4349 = vst [vmem:[#allocation30_spill] sm:$0xff] %v3975_v0  ;;  %4350 = vst [vmem:[#allocation31_spill] sm:$0xff] %v3978_v10  ;;  %v3985_v53 = vadd.f32 %v382_v23, %v115_v21  ;;  %v3988_v30 = vadd.f32 %v455_v31, %v3918_v17  ;;  %v420_v0 = vadd.f32 %v3916_v16, %v3912_v14 }
 0x149   :  { %4351 = vst [vmem:[#allocation32_spill] sm:$0xff] %v3980_v27  ;;  %4352 = vst [vmem:[#allocation33_spill] sm:$0xff] %v3983_v25  ;;  %v422_v10 = vadd.f32 %v421_v20, %v3918_v17 }
 0x14a   :  { %4353 = vst [vmem:[#allocation34_spill] sm:$0xff] %v3985_v53  ;;  %4354 = vst [vmem:[#allocation35_spill] sm:$0xff] %v3988_v30 }
 0x14c   :  { %v723_v8 = vpop.f32.mrb[16].mxu0  ;;  %v764_v27 = vpop.f32.mrb[16].mxu1 }
 0x14d   :  { %v771_v35 = vadd.f32 %v723_v8, %v347_v13  ;;  %v773_v22 = vadd.f32 %v764_v27, %v420_v0  ;;  %v725_v12 = vpop.f32.mrb[17].mxu0  ;;  %v766_v25 = vpop.f32.mrb[17].mxu1 }
 0x14e   :  { %v772_v11 = vadd.f32 %v725_v12, %v349_v6  ;;  %v774_v23 = vadd.f32 %v766_v25, %v422_v10  ;;  %v727_v53 = vpop.f32.mrb[18].mxu0  ;;  %v768_v9 = vpop.f32.mrb[18].mxu1 }
 0x14f   :  { %v3059_v31 = vmul.f32 -1.442695, %v771_v35  ;;  %v728_v30 = vpop.f32.mrb[19].mxu0  ;;  %v769_v7 = vpop.f32.mrb[19].mxu1  ;;  %v3061_v14 = vmul.f32 -1.442695, %v773_v22 }
 0x150   :  { %v3060_v15 = vmul.f32 -1.442695, %v772_v11  ;;  %v4355_v30 = vmov 0  }
 0x151   :  { %3465 = vpow2.f32 %v3059_v31 }
 0x152   :  { %3467 = vpow2.f32 %v3060_v15 }
 0x153   :  { %3469 = vtanh.f32 %v774_v23 }
 0x154   :  { %3471 = vpow2.f32 %v3061_v14 }
 0x15b   :  { %v3466_v16 = vpop.eup %3465 }
 0x15c   :  { %v784_v18 = vadd.f32 1.0, %v3466_v16  ;;  %v3468_v17 = vpop.eup %3467 }
 0x15d   :  { %v785_v0 = vadd.f32 1.0, %v3468_v17  ;;  %v3470_v19 = vpop.eup %3469 }
 0x15e   :  { %3473 = vrcp.f32 %v784_v18  ;;  %v3472_v20 = vpop.eup %3471 }
 0x15f   :  { %3475 = vrcp.f32 %v785_v0  ;;  %v786_v53 = vadd.f32 1.0, %v3472_v20 }
 0x161   :  { %3477 = vrcp.f32 %v786_v53 }
 0x168   :  { %v3474_v21 = vpop.eup %3473 }
 0x169   :  { %v795_v27 = vmul.f32 %v3474_v21, %v3470_v19  ;;  %v3476_v9 = vpop.eup %3475 }
 0x16a   :  { %v794_v25 = vmul.f32 0.0, %v3476_v9 }
 0x16b   :  { %v3478_v11 = vpop.eup %3477 }
 0x16c   :  { %v3994_v7 = vadd.f32 %v795_v27, %v794_v25 }
 0x16e   :  { %3479 = vtanh.f32 %v3994_v7 }
 0x178   :  { %v3480_v22 = vpop.eup %3479 }
 0x179   :  { %v798_v35 = vmul.f32 %v3480_v22, %v3478_v11 }
 0x17b   :  { %v799_v10 = vpack.c.bf16 %v798_v35, %v798_v35 }
 0x17d   :  { %800 = vst [vmem:[#allocation11] sm:$0xf] %v799_v10  ;;  %1031 = vmatmul.mubr.bf16.vlgmr.msra.gmra.mrb[20].mxu0 %v799_v10  ;;  %1072 = vmatmul.mubr.bf16.vlgmr.msra.gmra.mrb[20].mxu1 %v799_v10 }
 0x17e   :  { %1309 = vmatpush1.bf16.msra.mxu0 %v3773_v36  ;;  %1350 = vmatpush1.bf16.msra.mxu1 %v3775_v37 }
 0x17f   :  { %1310 = vmatprep.subr.bf16.mxu0 %v3779_v38  ;;  %1351 = vmatprep.subr.bf16.mxu1 %v3781_v39 }
 0x180   :  { %1340 = vmatprep.mubr.bf16.mxu0 %v4355_v30  ;;  %1381 = vmatprep.mubr.bf16.mxu1 %v4355_v30 }
 0x182   :  { %1311 = vmatpush1.bf16.msra.mxu0 %v3783_v40  ;;  %1352 = vmatpush1.bf16.msra.mxu1 %v3787_v41 }
 0x183   :  { %1312 = vmatprep.subr.bf16.mxu0 %v3791_v42  ;;  %1353 = vmatprep.subr.bf16.mxu1 %v3793_v43 }
 0x186   :  { %1313 = vmatpush1.bf16.msra.mxu0 %v3797_v45  ;;  %1354 = vmatpush1.bf16.msra.mxu1 %v3799_v46 }
 0x187   :  { %1314 = vmatprep.subr.bf16.mxu0 %v3803_v47  ;;  %1355 = vmatprep.subr.bf16.mxu1 %v3807_v48 }
 0x18a   :  { %1315 = vmatpush1.bf16.msra.mxu0 %v3809_v49  ;;  %1356 = vmatpush1.bf16.msra.mxu1 %v3811_v50 }
 0x18b   :  { %1316 = vmatprep.subr.bf16.mxu0 %v3815_v51  ;;  %1357 = vmatprep.subr.bf16.mxu1 %v3819_v52 }
 0x18e   :  { %1317 = vmatpush1.bf16.msra.mxu0 %v3823_v54  ;;  %1358 = vmatpush1.bf16.msra.mxu1 %v3825_v55 }
 0x18f   :  { %1318 = vmatprep.subr.bf16.mxu0 %v3827_v56  ;;  %1359 = vmatprep.subr.bf16.mxu1 %v3829_v57 }
 0x192   :  { %1319 = vmatpush1.bf16.msra.mxu0 %v3835_v58  ;;  %1360 = vmatpush1.bf16.msra.mxu1 %v3837_v59 }
 0x193   :  { %1320 = vmatprep.subr.bf16.mxu0 %v3839_v60  ;;  %1361 = vmatprep.subr.bf16.mxu1 %v3841_v61 }
 0x196   :  { %1321 = vmatpush1.bf16.msra.mxu0 %v3849_v63  ;;  %1362 = vmatpush1.bf16.msra.mxu1 %v3851_v1 }
 0x197   :  { %1322 = vmatprep.subr.bf16.mxu0 %v3853_v2  ;;  %1363 = vmatprep.subr.bf16.mxu1 %v3859_v3 }
 0x19a   :  { %1323 = vmatpush1.bf16.msra.mxu0 %v3863_v4  ;;  %1364 = vmatpush1.bf16.msra.mxu1 %v3865_v5 }
 0x19b   :  { %1618 = vmatprep.subr.bf16.mxu0 %v3769_v33  ;;  %1659 = vmatprep.subr.bf16.mxu1 %v3771_v34 }
 0x250   :  { %v1032_v13 = vpop.f32.mrb[20].mxu0  ;;  %v1073_v6 = vpop.f32.mrb[20].mxu1 }
 0x251   :  { %v1080_v8 = vadd.f32 %v1032_v13, %v3920_v24  ;;  %v1082_v12 = vadd.f32 %v1073_v6, %v3923_v26  ;;  %v1034_v23 = vpop.f32.mrb[21].mxu0  ;;  %v1075_v31 = vpop.f32.mrb[21].mxu1 }
 0x252   :  { %v1081_v15 = vadd.f32 %v1034_v23, %v3925_v28  ;;  %v1083_v14 = vadd.f32 %v1075_v31, %v3928_v29  ;;  %v1036_v16 = vpop.f32.mrb[22].mxu0  ;;  %v1077_v18 = vpop.f32.mrb[22].mxu1  ;;  %v4093_v23 = vld [vmem:[#allocation10 + $0x24] ss:$16 sps:$4 sm:$0xff]   ;;  %v4095_v31 = vld [vmem:[#allocation10 + $0x2c] ss:$16 sps:$4 sm:$0xff]  }
 0x253   :  { %v3094_v17 = vmul.f32 -1.442695, %v1080_v8  ;;  %v1037_v0 = vpop.f32.mrb[23].mxu0  ;;  %v1078_v19 = vpop.f32.mrb[23].mxu1  ;;  %v3096_v34 = vmul.f32 -1.442695, %v1082_v12 }
 0x254   :  { %v3095_v33 = vmul.f32 -1.442695, %v1081_v15  ;;  %v4085_v8 = vld [vmem:[#allocation10] ss:$16 sps:$4 sm:$0xff]   ;;  %v4087_v12 = vld [vmem:[#allocation10 + $0x8] ss:$16 sps:$4 sm:$0xff]  }
 0x255   :  { %3481 = vpow2.f32 %v3094_v17  ;;  %v4097_v15 = vld [vmem:[#allocation10 + $0x20] ss:$16 sps:$4 sm:$0xff]   ;;  %v4105_v16 = vld [vmem:[#allocation10 + $0x44] ss:$16 sps:$4 sm:$0xff]   ;;  %v4107_v18 = vld [vmem:[#allocation10 + $0x4c] ss:$16 sps:$4 sm:$0xff]  }
 0x256   :  { %3483 = vpow2.f32 %v3095_v33  ;;  %v4109_v17 = vld [vmem:[#allocation10 + $0x40] ss:$16 sps:$4 sm:$0xff]   ;;  %v4111_v0 = vld [vmem:[#allocation10 + $0x48] ss:$16 sps:$4 sm:$0xff]   ;;  %v4117_v19 = vld [vmem:[#allocation10 + $0x64] ss:$16 sps:$4 sm:$0xff]  }
 0x257   :  { %3485 = vtanh.f32 %v1083_v14  ;;  %v4099_v14 = vld [vmem:[#allocation10 + $0x28] ss:$16 sps:$4 sm:$0xff]   ;;  %v4119_v33 = vld [vmem:[#allocation10 + $0x6c] ss:$16 sps:$4 sm:$0xff]  }
 0x258   :  { %3487 = vpow2.f32 %v3096_v34  ;;  %v4121_v34 = vld [vmem:[#allocation10 + $0x60] ss:$16 sps:$4 sm:$0xff]  }
 0x25f   :  { %v3482_v20 = vpop.eup %3481 }
 0x260   :  { %v1093_v21 = vadd.f32 1.0, %v3482_v20  ;;  %v3484_v24 = vpop.eup %3483  ;;  %v4123_v20 = vld [vmem:[#allocation10 + $0x68] ss:$16 sps:$4 sm:$0xff]  }
 0x261   :  { %v1094_v26 = vadd.f32 1.0, %v3484_v24  ;;  %v3486_v28 = vpop.eup %3485  ;;  %v4131_v24 = vld [vmem:[#allocation10 + $0x8c] ss:$16 sps:$4 sm:$0xff]  }
 0x262   :  { %3489 = vrcp.f32 %v1093_v21  ;;  %v3488_v27 = vpop.eup %3487  ;;  %v4129_v21 = vld [vmem:[#allocation10 + $0x84] ss:$16 sps:$4 sm:$0xff]  }
 0x263   :  { %3491 = vrcp.f32 %v1094_v26  ;;  %v1095_v25 = vadd.f32 1.0, %v3488_v27  ;;  %v4133_v26 = vld [vmem:[#allocation10 + $0x80] ss:$16 sps:$4 sm:$0xff]  }
 0x264   :  { %v4141_v27 = vld [vmem:[#allocation10 + $0xa0] ss:$16 sps:$4 sm:$0xff]  }
 0x265   :  { %3493 = vrcp.f32 %v1095_v25  ;;  %v4149_v25 = vld [vmem:[#allocation10 + $0xc4] ss:$16 sps:$4 sm:$0xff]  }
 0x26c   :  { %v3490_v29 = vpop.eup %3489 }
 0x26d   :  { %v1104_v9 = vmul.f32 %v3490_v29, %v3486_v28  ;;  %v3492_v53 = vpop.eup %3491  ;;  %v4135_v28 = vld [vmem:[#allocation10 + $0x88] ss:$16 sps:$4 sm:$0xff]   ;;  %v4143_v29 = vld [vmem:[#allocation10 + $0xa4] ss:$16 sps:$4 sm:$0xff]  }
 0x26e   :  { %v1103_v11 = vmul.f32 %v3492_v53, %v3994_v7  ;;  %v4083_v7 = vld [vmem:[#allocation10 + $0xc] ss:$16 sps:$4 sm:$0xff]  }
 0x26f   :  { %v3494_v35 = vpop.eup %3493  ;;  %v4147_v53 = vld [vmem:[#allocation10 + $0xac] ss:$16 sps:$4 sm:$0xff]  }
 0x270   :  { %v4036_v22 = vadd.f32 %v1104_v9, %v1103_v11  ;;  %v4145_v9 = vld [vmem:[#allocation10 + $0xa8] ss:$16 sps:$4 sm:$0xff]   ;;  %v4152_v11 = vld [vmem:[#allocation10 + $0xcc] ss:$16 sps:$4 sm:$0xff]  }
 0x272   :  { %3495 = vtanh.f32 %v4036_v22 }
 0x27c   :  { %v3496_v10 = vpop.eup %3495 }
 0x27d   :  { %v1107_v13 = vmul.f32 %v3496_v10, %v3494_v35  ;;  %v4159_v35 = vld [vmem:[#allocation10 + $0xc8] ss:$16 sps:$4 sm:$0xff]   ;;  %v4163_v10 = vld [vmem:[#allocation10 + $0xe4] ss:$16 sps:$4 sm:$0xff]  }
 0x27f   :  { %v1108_v6 = vpack.c.bf16 %v1107_v13, %v1107_v13  ;;  %v4165_v13 = vld [vmem:[#allocation10 + $0xec] ss:$16 sps:$4 sm:$0xff]  }
 0x281   :  { %1110 = vst [vmem:[#allocation11 + $0x4] sm:$0xf] %v1108_v6  ;;  %1341 = vmatmul.mubr.bf16.vlgmr.msra.gmra.mrb[24].mxu0 %v1108_v6  ;;  %1382 = vmatmul.mubr.bf16.vlgmr.msra.gmra.mrb[24].mxu1 %v1108_v6  ;;  %v4169_v6 = vld [vmem:[#allocation10 + $0xe0] ss:$16 sps:$4 sm:$0xff]  }
 0x282   :  { %1619 = vmatpush1.bf16.msra.mxu0 %v3773_v36  ;;  %1660 = vmatpush1.bf16.msra.mxu1 %v3775_v37 }
 0x283   :  { %1620 = vmatprep.subr.bf16.mxu0 %v3779_v38  ;;  %1661 = vmatprep.subr.bf16.mxu1 %v3781_v39 }
 0x284   :  { %1650 = vmatprep.mubr.bf16.mxu0 %v4355_v30  ;;  %1691 = vmatprep.mubr.bf16.mxu1 %v4355_v30 }
 0x286   :  { %1621 = vmatpush1.bf16.msra.mxu0 %v3783_v40  ;;  %1662 = vmatpush1.bf16.msra.mxu1 %v3787_v41 }
 0x287   :  { %1622 = vmatprep.subr.bf16.mxu0 %v3791_v42  ;;  %1663 = vmatprep.subr.bf16.mxu1 %v3793_v43  ;;  %v4356_v43 = vld [vmem:[#allocation15_spill] sm:$0xff] }
 0x28a   :  { %1623 = vmatpush1.bf16.msra.mxu0 %v3797_v45  ;;  %1664 = vmatpush1.bf16.msra.mxu1 %v3799_v46 }
 0x28b   :  { %1624 = vmatprep.subr.bf16.mxu0 %v3803_v47  ;;  %1665 = vmatprep.subr.bf16.mxu1 %v3807_v48 }
 0x28e   :  { %1625 = vmatpush1.bf16.msra.mxu0 %v3809_v49  ;;  %1666 = vmatpush1.bf16.msra.mxu1 %v3811_v50 }
 0x28f   :  { %1626 = vmatprep.subr.bf16.mxu0 %v3815_v51  ;;  %1667 = vmatprep.subr.bf16.mxu1 %v3819_v52 }
 0x292   :  { %1627 = vmatpush1.bf16.msra.mxu0 %v3823_v54  ;;  %1668 = vmatpush1.bf16.msra.mxu1 %v3825_v55 }
 0x293   :  { %1628 = vmatprep.subr.bf16.mxu0 %v3827_v56  ;;  %1669 = vmatprep.subr.bf16.mxu1 %v3829_v57 }
 0x296   :  { %1629 = vmatpush1.bf16.msra.mxu0 %v3835_v58  ;;  %1670 = vmatpush1.bf16.msra.mxu1 %v3837_v59 }
 0x297   :  { %1630 = vmatprep.subr.bf16.mxu0 %v3839_v60  ;;  %1671 = vmatprep.subr.bf16.mxu1 %v3841_v61 }
 0x29a   :  { %1631 = vmatpush1.bf16.msra.mxu0 %v3849_v63  ;;  %1672 = vmatpush1.bf16.msra.mxu1 %v3851_v1 }
 0x29b   :  { %1632 = vmatprep.subr.bf16.mxu0 %v3853_v2  ;;  %1673 = vmatprep.subr.bf16.mxu1 %v3859_v3 }
 0x29e   :  { %1633 = vmatpush1.bf16.msra.mxu0 %v3863_v4  ;;  %1674 = vmatpush1.bf16.msra.mxu1 %v3865_v5 }
 0x29f   :  { %1969 = vmatprep.subr.bf16.mxu1 %v4083_v7 }
 0x354   :  { %v1342_v36 = vpop.f32.mrb[24].mxu0  ;;  %v1383_v37 = vpop.f32.mrb[24].mxu1 }
 0x355   :  { %v1390_v38 = vadd.f32 %v1342_v36, %v3930_v32  ;;  %v1392_v39 = vadd.f32 %v1383_v37, %v3933_v44  ;;  %v1344_v40 = vpop.f32.mrb[25].mxu0  ;;  %v1385_v41 = vpop.f32.mrb[25].mxu1  ;;  %v4171_v36 = vld [vmem:[#allocation10 + $0xe8] ss:$16 sps:$4 sm:$0xff]  }
 0x356   :  { %v1391_v42 = vadd.f32 %v1344_v40, %v3935_v62  ;;  %v1393_v45 = vadd.f32 %v1385_v41, %v4356_v43  ;;  %v1346_v46 = vpop.f32.mrb[26].mxu0  ;;  %v1387_v47 = vpop.f32.mrb[26].mxu1  ;;  %v4081_v62 = vld [vmem:[#allocation10 + $0x4] ss:$16 sps:$4 sm:$0xff]  }
 0x357   :  { %v3129_v48 = vmul.f32 -1.442695, %v1390_v38  ;;  %v1347_v49 = vpop.f32.mrb[27].mxu0  ;;  %v1388_v50 = vpop.f32.mrb[27].mxu1  ;;  %v3131_v52 = vmul.f32 -1.442695, %v1392_v39  ;;  %1928 = vmatprep.subr.bf16.mxu0 %v4081_v62 }
 0x358   :  { %v3130_v51 = vmul.f32 -1.442695, %v1391_v42  ;;  %v4357_v39 = vld [vmem:[#allocation16_spill] sm:$0xff]  ;;  %v4358_v41 = vld [vmem:[#allocation17_spill] sm:$0xff]  ;;  %v4359_v46 = vld [vmem:[#allocation18_spill] sm:$0xff] }
 0x359   :  { %3497 = vpow2.f32 %v3129_v48  ;;  %v4360_v48 = vld [vmem:[#allocation19_spill] sm:$0xff] }
 0x35a   :  { %3499 = vpow2.f32 %v3130_v51 }
 0x35b   :  { %3501 = vtanh.f32 %v1393_v45 }
 0x35c   :  { %3503 = vpow2.f32 %v3131_v52 }
 0x363   :  { %v3498_v54 = vpop.eup %3497 }
 0x364   :  { %v1403_v55 = vadd.f32 1.0, %v3498_v54  ;;  %v3500_v56 = vpop.eup %3499 }
 0x365   :  { %v1404_v57 = vadd.f32 1.0, %v3500_v56  ;;  %v3502_v58 = vpop.eup %3501 }
 0x366   :  { %3505 = vrcp.f32 %v1403_v55  ;;  %v3504_v59 = vpop.eup %3503 }
 0x367   :  { %3507 = vrcp.f32 %v1404_v57  ;;  %v1405_v1 = vadd.f32 1.0, %v3504_v59 }
 0x369   :  { %3509 = vrcp.f32 %v1405_v1 }
 0x370   :  { %v3506_v60 = vpop.eup %3505 }
 0x371   :  { %v1414_v61 = vmul.f32 %v3506_v60, %v3502_v58  ;;  %v3508_v63 = vpop.eup %3507 }
 0x372   :  { %v1413_v2 = vmul.f32 %v3508_v63, %v4036_v22  ;;  %v4157_v22 = vld [vmem:[#allocation10 + $0xc0] ss:$16 sps:$4 sm:$0xff]  }
 0x373   :  { %v3510_v4 = vpop.eup %3509 }
 0x374   :  { %v4076_v3 = vadd.f32 %v1414_v61, %v1413_v2 }
 0x376   :  { %3511 = vtanh.f32 %v4076_v3 }
 0x380   :  { %v3512_v5 = vpop.eup %3511 }
 0x381   :  { %v1417_v32 = vmul.f32 %v3512_v5, %v3510_v4 }
 0x383   :  { %v1418_v44 = vpack.c.bf16 %v1417_v32, %v1417_v32 }
 0x385   :  { %1420 = vst [vmem:[#allocation11 + $0x8] sm:$0xf] %v1418_v44  ;;  %1651 = vmatmul.mubr.bf16.vlgmr.msra.gmra.mrb[28].mxu0 %v1418_v44  ;;  %1692 = vmatmul.mubr.bf16.vlgmr.msra.gmra.mrb[28].mxu1 %v1418_v44 }
 0x386   :  { %1960 = vmatprep.mubr.bf16.mxu0 %v4355_v30  ;;  %2001 = vmatprep.mubr.bf16.mxu1 %v4355_v30 }
 0x387   :  { %1929 = vmatpush1.bf16.msra.mxu0 %v4085_v8  ;;  %1970 = vmatpush1.bf16.msra.mxu1 %v4087_v12 }
 0x388   :  { %1930 = vmatprep.subr.bf16.mxu0 %v4093_v23  ;;  %1971 = vmatprep.subr.bf16.mxu1 %v4095_v31 }
 0x38b   :  { %1931 = vmatpush1.bf16.msra.mxu0 %v4097_v15  ;;  %1972 = vmatpush1.bf16.msra.mxu1 %v4099_v14 }
 0x38c   :  { %1932 = vmatprep.subr.bf16.mxu0 %v4105_v16  ;;  %1973 = vmatprep.subr.bf16.mxu1 %v4107_v18 }
 0x38f   :  { %1933 = vmatpush1.bf16.msra.mxu0 %v4109_v17  ;;  %1974 = vmatpush1.bf16.msra.mxu1 %v4111_v0 }
 0x390   :  { %1934 = vmatprep.subr.bf16.mxu0 %v4117_v19  ;;  %1975 = vmatprep.subr.bf16.mxu1 %v4119_v33 }
 0x393   :  { %1935 = vmatpush1.bf16.msra.mxu0 %v4121_v34  ;;  %1976 = vmatpush1.bf16.msra.mxu1 %v4123_v20 }
 0x394   :  { %1936 = vmatprep.subr.bf16.mxu0 %v4129_v21  ;;  %1977 = vmatprep.subr.bf16.mxu1 %v4131_v24 }
 0x397   :  { %1937 = vmatpush1.bf16.msra.mxu0 %v4133_v26  ;;  %1978 = vmatpush1.bf16.msra.mxu1 %v4135_v28 }
 0x398   :  { %1938 = vmatprep.subr.bf16.mxu0 %v4143_v29  ;;  %1979 = vmatprep.subr.bf16.mxu1 %v4147_v53 }
 0x39b   :  { %1939 = vmatpush1.bf16.msra.mxu0 %v4141_v27  ;;  %1980 = vmatpush1.bf16.msra.mxu1 %v4145_v9 }
 0x39c   :  { %1940 = vmatprep.subr.bf16.mxu0 %v4149_v25  ;;  %1981 = vmatprep.subr.bf16.mxu1 %v4152_v11 }
 0x39f   :  { %1941 = vmatpush1.bf16.msra.mxu0 %v4157_v22  ;;  %1982 = vmatpush1.bf16.msra.mxu1 %v4159_v35 }
 0x3a0   :  { %1942 = vmatprep.subr.bf16.mxu0 %v4163_v10  ;;  %1983 = vmatprep.subr.bf16.mxu1 %v4165_v13 }
 0x3a3   :  { %1943 = vmatpush1.bf16.msra.mxu0 %v4169_v6  ;;  %1984 = vmatpush1.bf16.msra.mxu1 %v4171_v36 }
 0x3a4   :  { %2238 = vmatprep.subr.bf16.mxu0 %v4081_v62  ;;  %2279 = vmatprep.subr.bf16.mxu1 %v4083_v7 }
 0x458   :  { %v1652_v37 = vpop.f32.mrb[28].mxu0  ;;  %v1693_v38 = vpop.f32.mrb[28].mxu1 }
 0x459   :  { %v1700_v40 = vadd.f32 %v1652_v37, %v4357_v39  ;;  %v1702_v42 = vadd.f32 %v1693_v38, %v4358_v41  ;;  %v1654_v43 = vpop.f32.mrb[29].mxu0  ;;  %v1695_v45 = vpop.f32.mrb[29].mxu1 }
 0x45a   :  { %v1701_v47 = vadd.f32 %v1654_v43, %v4359_v46  ;;  %v1703_v49 = vadd.f32 %v1695_v45, %v4360_v48  ;;  %v1656_v50 = vpop.f32.mrb[30].mxu0  ;;  %v1697_v51 = vpop.f32.mrb[30].mxu1  ;;  %v4361_v43 = vld [vmem:[#allocation20_spill] sm:$0xff]  ;;  %v4362_v46 = vld [vmem:[#allocation21_spill] sm:$0xff] }
 0x45b   :  { %v3164_v52 = vmul.f32 -1.442695, %v1700_v40  ;;  %v1657_v54 = vpop.f32.mrb[31].mxu0  ;;  %v1698_v55 = vpop.f32.mrb[31].mxu1  ;;  %v3166_v57 = vmul.f32 -1.442695, %v1702_v42 }
 0x45c   :  { %v3165_v56 = vmul.f32 -1.442695, %v1701_v47  ;;  %v4363_v50 = vld [vmem:[#allocation22_spill] sm:$0xff] }
 0x45d   :  { %3513 = vpow2.f32 %v3164_v52  ;;  %v4364_v52 = vld [vmem:[#allocation23_spill] sm:$0xff] }
 0x45e   :  { %3515 = vpow2.f32 %v3165_v56 }
 0x45f   :  { %3517 = vtanh.f32 %v1703_v49 }
 0x460   :  { %3519 = vpow2.f32 %v3166_v57 }
 0x467   :  { %v3514_v58 = vpop.eup %3513 }
 0x468   :  { %v1713_v59 = vadd.f32 1.0, %v3514_v58  ;;  %v3516_v60 = vpop.eup %3515 }
 0x469   :  { %v1714_v61 = vadd.f32 1.0, %v3516_v60  ;;  %v3518_v63 = vpop.eup %3517 }
 0x46a   :  { %3521 = vrcp.f32 %v1713_v59  ;;  %v3520_v1 = vpop.eup %3519 }
 0x46b   :  { %3523 = vrcp.f32 %v1714_v61  ;;  %v1715_v32 = vadd.f32 1.0, %v3520_v1 }
 0x46d   :  { %3525 = vrcp.f32 %v1715_v32 }
 0x474   :  { %v3522_v2 = vpop.eup %3521 }
 0x475   :  { %v1724_v4 = vmul.f32 %v3522_v2, %v3518_v63  ;;  %v3524_v5 = vpop.eup %3523 }
 0x476   :  { %v1723_v44 = vmul.f32 %v3524_v5, %v4076_v3 }
 0x477   :  { %v3526_v38 = vpop.eup %3525 }
 0x478   :  { %v4184_v37 = vadd.f32 %v1724_v4, %v1723_v44 }
 0x47a   :  { %3527 = vtanh.f32 %v4184_v37 }
 0x484   :  { %v3528_v39 = vpop.eup %3527 }
 0x485   :  { %v1727_v40 = vmul.f32 %v3528_v39, %v3526_v38 }
 0x487   :  { %v1728_v41 = vpack.c.bf16 %v1727_v40, %v1727_v40 }
 0x489   :  { %1730 = vst [vmem:[#allocation11 + $0xc] sm:$0xf] %v1728_v41  ;;  %1961 = vmatmul.mubr.bf16.vlgmr.msra.gmra.mrb[32].mxu0 %v1728_v41  ;;  %2002 = vmatmul.mubr.bf16.vlgmr.msra.gmra.mrb[32].mxu1 %v1728_v41 }
 0x48a   :  { %2239 = vmatpush1.bf16.msra.mxu0 %v4085_v8  ;;  %2280 = vmatpush1.bf16.msra.mxu1 %v4087_v12 }
 0x48b   :  { %2240 = vmatprep.subr.bf16.mxu0 %v4093_v23  ;;  %2281 = vmatprep.subr.bf16.mxu1 %v4095_v31 }
 0x48c   :  { %2270 = vmatprep.mubr.bf16.mxu0 %v4355_v30  ;;  %2311 = vmatprep.mubr.bf16.mxu1 %v4355_v30 }
 0x48e   :  { %2241 = vmatpush1.bf16.msra.mxu0 %v4097_v15  ;;  %2282 = vmatpush1.bf16.msra.mxu1 %v4099_v14 }
 0x48f   :  { %2242 = vmatprep.subr.bf16.mxu0 %v4105_v16  ;;  %2283 = vmatprep.subr.bf16.mxu1 %v4107_v18 }
 0x492   :  { %2243 = vmatpush1.bf16.msra.mxu0 %v4109_v17  ;;  %2284 = vmatpush1.bf16.msra.mxu1 %v4111_v0 }
 0x493   :  { %2244 = vmatprep.subr.bf16.mxu0 %v4117_v19  ;;  %2285 = vmatprep.subr.bf16.mxu1 %v4119_v33 }
 0x496   :  { %2245 = vmatpush1.bf16.msra.mxu0 %v4121_v34  ;;  %2286 = vmatpush1.bf16.msra.mxu1 %v4123_v20 }
 0x497   :  { %2246 = vmatprep.subr.bf16.mxu0 %v4129_v21  ;;  %2287 = vmatprep.subr.bf16.mxu1 %v4131_v24 }
 0x49a   :  { %2247 = vmatpush1.bf16.msra.mxu0 %v4133_v26  ;;  %2288 = vmatpush1.bf16.msra.mxu1 %v4135_v28 }
 0x49b   :  { %2248 = vmatprep.subr.bf16.mxu0 %v4143_v29  ;;  %2289 = vmatprep.subr.bf16.mxu1 %v4147_v53 }
 0x49e   :  { %2249 = vmatpush1.bf16.msra.mxu0 %v4141_v27  ;;  %2290 = vmatpush1.bf16.msra.mxu1 %v4145_v9 }
 0x49f   :  { %2250 = vmatprep.subr.bf16.mxu0 %v4149_v25  ;;  %2291 = vmatprep.subr.bf16.mxu1 %v4152_v11 }
 0x4a2   :  { %2251 = vmatpush1.bf16.msra.mxu0 %v4157_v22  ;;  %2292 = vmatpush1.bf16.msra.mxu1 %v4159_v35 }
 0x4a3   :  { %2252 = vmatprep.subr.bf16.mxu0 %v4163_v10  ;;  %2293 = vmatprep.subr.bf16.mxu1 %v4165_v13 }
 0x4a6   :  { %2253 = vmatpush1.bf16.msra.mxu0 %v4169_v6  ;;  %2294 = vmatpush1.bf16.msra.mxu1 %v4171_v36 }
 0x4a7   :  { %2548 = vmatprep.subr.bf16.mxu0 %v4081_v62  ;;  %2589 = vmatprep.subr.bf16.mxu1 %v4083_v7 }
 0x55c   :  { %v1962_v3 = vpop.f32.mrb[32].mxu0  ;;  %v2003_v42 = vpop.f32.mrb[32].mxu1 }
 0x55d   :  { %v2010_v45 = vadd.f32 %v1962_v3, %v4361_v43  ;;  %v2012_v47 = vadd.f32 %v2003_v42, %v4362_v46  ;;  %v1964_v48 = vpop.f32.mrb[33].mxu0  ;;  %v2005_v49 = vpop.f32.mrb[33].mxu1 }
 0x55e   :  { %v2011_v51 = vadd.f32 %v1964_v48, %v4363_v50  ;;  %v2013_v54 = vadd.f32 %v2005_v49, %v4364_v52  ;;  %v1966_v55 = vpop.f32.mrb[34].mxu0  ;;  %v2007_v56 = vpop.f32.mrb[34].mxu1  ;;  %v4365_v48 = vld [vmem:[#allocation24_spill] sm:$0xff]  ;;  %v4366_v50 = vld [vmem:[#allocation25_spill] sm:$0xff] }
 0x55f   :  { %v3199_v57 = vmul.f32 -1.442695, %v2010_v45  ;;  %v1967_v58 = vpop.f32.mrb[35].mxu0  ;;  %v2008_v59 = vpop.f32.mrb[35].mxu1  ;;  %v3201_v61 = vmul.f32 -1.442695, %v2012_v47 }
 0x560   :  { %v3200_v60 = vmul.f32 -1.442695, %v2011_v51  ;;  %v4367_v55 = vld [vmem:[#allocation26_spill] sm:$0xff] }
 0x561   :  { %3529 = vpow2.f32 %v3199_v57  ;;  %v4368_v57 = vld [vmem:[#allocation27_spill] sm:$0xff] }
 0x562   :  { %3531 = vpow2.f32 %v3200_v60 }
 0x563   :  { %3533 = vtanh.f32 %v2013_v54 }
 0x564   :  { %3535 = vpow2.f32 %v3201_v61 }
 0x56b   :  { %v3530_v63 = vpop.eup %3529 }
 0x56c   :  { %v2023_v1 = vadd.f32 1.0, %v3530_v63  ;;  %v3532_v2 = vpop.eup %3531 }
 0x56d   :  { %v2024_v4 = vadd.f32 1.0, %v3532_v2  ;;  %v3534_v5 = vpop.eup %3533 }
 0x56e   :  { %3537 = vrcp.f32 %v2023_v1  ;;  %v3536_v32 = vpop.eup %3535 }
 0x56f   :  { %3539 = vrcp.f32 %v2024_v4  ;;  %v2025_v40 = vadd.f32 1.0, %v3536_v32 }
 0x571   :  { %3541 = vrcp.f32 %v2025_v40 }
 0x578   :  { %v3538_v44 = vpop.eup %3537 }
 0x579   :  { %v2034_v38 = vmul.f32 %v3538_v44, %v3534_v5  ;;  %v3540_v39 = vpop.eup %3539 }
 0x57a   :  { %v2033_v41 = vmul.f32 %v3540_v39, %v4184_v37 }
 0x57b   :  { %v3542_v42 = vpop.eup %3541 }
 0x57c   :  { %v4226_v3 = vadd.f32 %v2034_v38, %v2033_v41 }
 0x57e   :  { %3543 = vtanh.f32 %v4226_v3 }
 0x588   :  { %v3544_v43 = vpop.eup %3543 }
 0x589   :  { %v2037_v45 = vmul.f32 %v3544_v43, %v3542_v42 }
 0x58b   :  { %v2038_v46 = vpack.c.bf16 %v2037_v45, %v2037_v45 }
 0x58d   :  { %2040 = vst [vmem:[#allocation11 + $0x10] sm:$0xf] %v2038_v46  ;;  %2271 = vmatmul.mubr.bf16.vlgmr.msra.gmra.mrb[36].mxu0 %v2038_v46  ;;  %2312 = vmatmul.mubr.bf16.vlgmr.msra.gmra.mrb[36].mxu1 %v2038_v46 }
 0x58e   :  { %2549 = vmatpush1.bf16.msra.mxu0 %v4085_v8  ;;  %2590 = vmatpush1.bf16.msra.mxu1 %v4087_v12 }
 0x58f   :  { %2550 = vmatprep.subr.bf16.mxu0 %v4093_v23  ;;  %2591 = vmatprep.subr.bf16.mxu1 %v4095_v31 }
 0x590   :  { %2580 = vmatprep.mubr.bf16.mxu0 %v4355_v30  ;;  %2621 = vmatprep.mubr.bf16.mxu1 %v4355_v30 }
 0x592   :  { %2551 = vmatpush1.bf16.msra.mxu0 %v4097_v15  ;;  %2592 = vmatpush1.bf16.msra.mxu1 %v4099_v14 }
 0x593   :  { %2552 = vmatprep.subr.bf16.mxu0 %v4105_v16  ;;  %2593 = vmatprep.subr.bf16.mxu1 %v4107_v18 }
 0x596   :  { %2553 = vmatpush1.bf16.msra.mxu0 %v4109_v17  ;;  %2594 = vmatpush1.bf16.msra.mxu1 %v4111_v0 }
 0x597   :  { %2554 = vmatprep.subr.bf16.mxu0 %v4117_v19  ;;  %2595 = vmatprep.subr.bf16.mxu1 %v4119_v33 }
 0x59a   :  { %2555 = vmatpush1.bf16.msra.mxu0 %v4121_v34  ;;  %2596 = vmatpush1.bf16.msra.mxu1 %v4123_v20 }
 0x59b   :  { %2556 = vmatprep.subr.bf16.mxu0 %v4129_v21  ;;  %2597 = vmatprep.subr.bf16.mxu1 %v4131_v24 }
 0x59e   :  { %2557 = vmatpush1.bf16.msra.mxu0 %v4133_v26  ;;  %2598 = vmatpush1.bf16.msra.mxu1 %v4135_v28 }
 0x59f   :  { %2558 = vmatprep.subr.bf16.mxu0 %v4143_v29  ;;  %2599 = vmatprep.subr.bf16.mxu1 %v4147_v53 }
 0x5a2   :  { %2559 = vmatpush1.bf16.msra.mxu0 %v4141_v27  ;;  %2600 = vmatpush1.bf16.msra.mxu1 %v4145_v9 }
 0x5a3   :  { %2560 = vmatprep.subr.bf16.mxu0 %v4149_v25  ;;  %2601 = vmatprep.subr.bf16.mxu1 %v4152_v11 }
 0x5a6   :  { %2561 = vmatpush1.bf16.msra.mxu0 %v4157_v22  ;;  %2602 = vmatpush1.bf16.msra.mxu1 %v4159_v35 }
 0x5a7   :  { %2562 = vmatprep.subr.bf16.mxu0 %v4163_v10  ;;  %2603 = vmatprep.subr.bf16.mxu1 %v4165_v13 }
 0x5aa   :  { %2563 = vmatpush1.bf16.msra.mxu0 %v4169_v6  ;;  %2604 = vmatpush1.bf16.msra.mxu1 %v4171_v36 }
 0x5ab   :  { %2858 = vmatprep.subr.bf16.mxu0 %v4081_v62  ;;  %2899 = vmatprep.subr.bf16.mxu1 %v4083_v7 }
 0x660   :  { %v2272_v37 = vpop.f32.mrb[36].mxu0  ;;  %v2313_v47 = vpop.f32.mrb[36].mxu1 }
 0x661   :  { %v2320_v49 = vadd.f32 %v2272_v37, %v4365_v48  ;;  %v2322_v51 = vadd.f32 %v2313_v47, %v4366_v50  ;;  %v2274_v52 = vpop.f32.mrb[37].mxu0  ;;  %v2315_v54 = vpop.f32.mrb[37].mxu1 }
 0x662   :  { %v2321_v56 = vadd.f32 %v2274_v52, %v4367_v55  ;;  %v2323_v58 = vadd.f32 %v2315_v54, %v4368_v57  ;;  %v2276_v59 = vpop.f32.mrb[38].mxu0  ;;  %v2317_v60 = vpop.f32.mrb[38].mxu1  ;;  %v4373_v55 = vld [vmem:[#allocation32_spill] sm:$0xff]  ;;  %v4374_v57 = vld [vmem:[#allocation33_spill] sm:$0xff] }
 0x663   :  { %v3234_v61 = vmul.f32 -1.442695, %v2320_v49  ;;  %v2277_v63 = vpop.f32.mrb[39].mxu0  ;;  %v2318_v1 = vpop.f32.mrb[39].mxu1  ;;  %v3236_v7 = vmul.f32 -1.442695, %v2322_v51 }
 0x664   :  { %v3235_v62 = vmul.f32 -1.442695, %v2321_v56  ;;  %v4376_v1 = vld [vmem:[#allocation35_spill] sm:$0xff] }
 0x665   :  { %3545 = vpow2.f32 %v3234_v61  ;;  %v4375_v61 = vld [vmem:[#allocation34_spill] sm:$0xff] }
 0x666   :  { %3547 = vpow2.f32 %v3235_v62 }
 0x667   :  { %3549 = vtanh.f32 %v2323_v58 }
 0x668   :  { %3551 = vpow2.f32 %v3236_v7 }
 0x66f   :  { %v3546_v2 = vpop.eup %3545 }
 0x670   :  { %v2333_v4 = vadd.f32 1.0, %v3546_v2  ;;  %v3548_v5 = vpop.eup %3547 }
 0x671   :  { %v2334_v32 = vadd.f32 1.0, %v3548_v5  ;;  %v3550_v44 = vpop.eup %3549 }
 0x672   :  { %3553 = vrcp.f32 %v2333_v4  ;;  %v3552_v38 = vpop.eup %3551 }
 0x673   :  { %3555 = vrcp.f32 %v2334_v32  ;;  %v2335_v42 = vadd.f32 1.0, %v3552_v38 }
 0x675   :  { %3557 = vrcp.f32 %v2335_v42 }
 0x67c   :  { %v3554_v39 = vpop.eup %3553 }
 0x67d   :  { %v2344_v40 = vmul.f32 %v3554_v39, %v3550_v44  ;;  %v3556_v41 = vpop.eup %3555 }
 0x67e   :  { %v2343_v43 = vmul.f32 %v3556_v41, %v4226_v3 }
 0x67f   :  { %v3558_v46 = vpop.eup %3557 }
 0x680   :  { %v4268_v45 = vadd.f32 %v2344_v40, %v2343_v43 }
 0x682   :  { %3559 = vtanh.f32 %v4268_v45 }
 0x68c   :  { %v3560_v37 = vpop.eup %3559 }
 0x68d   :  { %v2347_v47 = vmul.f32 %v3560_v37, %v3558_v46 }
 0x68f   :  { %v2348_v48 = vpack.c.bf16 %v2347_v47, %v2347_v47 }
 0x691   :  { %2350 = vst [vmem:[#allocation11 + $0x14] sm:$0xf] %v2348_v48  ;;  %2581 = vmatmul.mubr.bf16.vlgmr.msra.gmra.mrb[40].mxu0 %v2348_v48  ;;  %2622 = vmatmul.mubr.bf16.vlgmr.msra.gmra.mrb[40].mxu1 %v2348_v48 }
 0x692   :  { %2859 = vmatpush1.bf16.msra.mxu0 %v4085_v8  ;;  %2900 = vmatpush1.bf16.msra.mxu1 %v4087_v12  ;;  %v4369_v12 = vld [vmem:[#allocation28_spill] sm:$0xff] }
 0x693   :  { %2860 = vmatprep.subr.bf16.mxu0 %v4093_v23  ;;  %2901 = vmatprep.subr.bf16.mxu1 %v4095_v31  ;;  %v4370_v31 = vld [vmem:[#allocation29_spill] sm:$0xff] }
 0x694   :  { %2890 = vmatprep.mubr.bf16.mxu0 %v4355_v30  ;;  %2931 = vmatprep.mubr.bf16.mxu1 %v4355_v30 }
 0x696   :  { %2861 = vmatpush1.bf16.msra.mxu0 %v4097_v15  ;;  %2902 = vmatpush1.bf16.msra.mxu1 %v4099_v14 }
 0x697   :  { %2862 = vmatprep.subr.bf16.mxu0 %v4105_v16  ;;  %2903 = vmatprep.subr.bf16.mxu1 %v4107_v18  ;;  %v4371_v18 = vld [vmem:[#allocation30_spill] sm:$0xff] }
 0x69a   :  { %2863 = vmatpush1.bf16.msra.mxu0 %v4109_v17  ;;  %2904 = vmatpush1.bf16.msra.mxu1 %v4111_v0  ;;  %v4372_v0 = vld [vmem:[#allocation31_spill] sm:$0xff] }
 0x69b   :  { %2864 = vmatprep.subr.bf16.mxu0 %v4117_v19  ;;  %2905 = vmatprep.subr.bf16.mxu1 %v4119_v33 }
 0x69e   :  { %2865 = vmatpush1.bf16.msra.mxu0 %v4121_v34  ;;  %2906 = vmatpush1.bf16.msra.mxu1 %v4123_v20 }
 0x69f   :  { %2866 = vmatprep.subr.bf16.mxu0 %v4129_v21  ;;  %2907 = vmatprep.subr.bf16.mxu1 %v4131_v24 }
 0x6a2   :  { %2867 = vmatpush1.bf16.msra.mxu0 %v4133_v26  ;;  %2908 = vmatpush1.bf16.msra.mxu1 %v4135_v28 }
 0x6a3   :  { %2868 = vmatprep.subr.bf16.mxu0 %v4143_v29  ;;  %2909 = vmatprep.subr.bf16.mxu1 %v4147_v53 }
 0x6a6   :  { %2869 = vmatpush1.bf16.msra.mxu0 %v4141_v27  ;;  %2910 = vmatpush1.bf16.msra.mxu1 %v4145_v9 }
 0x6a7   :  { %2870 = vmatprep.subr.bf16.mxu0 %v4149_v25  ;;  %2911 = vmatprep.subr.bf16.mxu1 %v4152_v11 }
 0x6aa   :  { %2871 = vmatpush1.bf16.msra.mxu0 %v4157_v22  ;;  %2912 = vmatpush1.bf16.msra.mxu1 %v4159_v35 }
 0x6ab   :  { %2872 = vmatprep.subr.bf16.mxu0 %v4163_v10  ;;  %2913 = vmatprep.subr.bf16.mxu1 %v4165_v13 }
 0x6ae   :  { %2873 = vmatpush1.bf16.msra.mxu0 %v4169_v6  ;;  %2914 = vmatpush1.bf16.msra.mxu1 %v4171_v36 }
 0x764   :  { %v2582_v30 = vpop.f32.mrb[40].mxu0  ;;  %v2623_v8 = vpop.f32.mrb[40].mxu1 }
 0x765   :  { %v2630_v23 = vadd.f32 %v2582_v30, %v4369_v12  ;;  %v2632_v15 = vadd.f32 %v2623_v8, %v4370_v31  ;;  %v2584_v14 = vpop.f32.mrb[41].mxu0  ;;  %v2625_v16 = vpop.f32.mrb[41].mxu1 }
 0x766   :  { %v2631_v17 = vadd.f32 %v2584_v14, %v4371_v18  ;;  %v2633_v19 = vadd.f32 %v2625_v16, %v4372_v0  ;;  %v2586_v33 = vpop.f32.mrb[42].mxu0  ;;  %v2627_v34 = vpop.f32.mrb[42].mxu1 }
 0x767   :  { %v3269_v20 = vmul.f32 -1.442695, %v2630_v23  ;;  %v2587_v21 = vpop.f32.mrb[43].mxu0  ;;  %v2628_v24 = vpop.f32.mrb[43].mxu1  ;;  %v3271_v28 = vmul.f32 -1.442695, %v2632_v15 }
 0x768   :  { %v3270_v26 = vmul.f32 -1.442695, %v2631_v17 }
 0x769   :  { %3561 = vpow2.f32 %v3269_v20 }
 0x76a   :  { %3563 = vpow2.f32 %v3270_v26 }
 0x76b   :  { %3565 = vtanh.f32 %v2633_v19 }
 0x76c   :  { %3567 = vpow2.f32 %v3271_v28 }
 0x773   :  { %v3562_v27 = vpop.eup %3561 }
 0x774   :  { %v2643_v29 = vadd.f32 1.0, %v3562_v27  ;;  %v3564_v9 = vpop.eup %3563 }
 0x775   :  { %v2644_v53 = vadd.f32 1.0, %v3564_v9  ;;  %v3566_v25 = vpop.eup %3565 }
 0x776   :  { %3569 = vrcp.f32 %v2643_v29  ;;  %v3568_v11 = vpop.eup %3567 }
 0x777   :  { %3571 = vrcp.f32 %v2644_v53  ;;  %v2645_v13 = vadd.f32 1.0, %v3568_v11 }
 0x779   :  { %3573 = vrcp.f32 %v2645_v13 }
 0x780   :  { %v3570_v22 = vpop.eup %3569 }
 0x781   :  { %v2654_v35 = vmul.f32 %v3570_v22, %v3566_v25  ;;  %v3572_v10 = vpop.eup %3571 }
 0x782   :  { %v2653_v6 = vmul.f32 %v3572_v10, %v4268_v45 }
 0x783   :  { %v3574_v3 = vpop.eup %3573 }
 0x784   :  { %v2655_v36 = vadd.f32 %v2654_v35, %v2653_v6 }
 0x786   :  { %3575 = vtanh.f32 %v2655_v36 }
 0x790   :  { %v3576_v49 = vpop.eup %3575 }
 0x791   :  { %v2657_v50 = vmul.f32 %v3576_v49, %v3574_v3 }
 0x793   :  { %v2658_v51 = vpack.c.bf16 %v2657_v50, %v2657_v50 }
 0x795   :  { %2660 = vst [vmem:[#allocation11 + $0x18] sm:$0xf] %v2658_v51  ;;  %2891 = vmatmul.mubr.bf16.vlgmr.msra.gmra.mrb[44].mxu0 %v2658_v51  ;;  %2932 = vmatmul.mubr.bf16.vlgmr.msra.gmra.mrb[44].mxu1 %v2658_v51 }
 0x868   :  { %v2892_v52 = vpop.f32.mrb[44].mxu0  ;;  %v2933_v54 = vpop.f32.mrb[44].mxu1 }
 0x869   :  { %v2940_v56 = vadd.f32 %v2892_v52, %v4373_v55  ;;  %v2942_v58 = vadd.f32 %v2933_v54, %v4374_v57  ;;  %v2894_v59 = vpop.f32.mrb[45].mxu0  ;;  %v2935_v60 = vpop.f32.mrb[45].mxu1 }
 0x86a   :  { %v2941_v63 = vadd.f32 %v2894_v59, %v4375_v61  ;;  %v2943_v62 = vadd.f32 %v2935_v60, %v4376_v1  ;;  %v2896_v7 = vpop.f32.mrb[46].mxu0  ;;  %v2937_v2 = vpop.f32.mrb[46].mxu1 }
 0x86b   :  { %v3304_v4 = vmul.f32 -1.442695, %v2940_v56  ;;  %v2897_v5 = vpop.f32.mrb[47].mxu0  ;;  %v2938_v32 = vpop.f32.mrb[47].mxu1  ;;  %v3306_v38 = vmul.f32 -1.442695, %v2942_v58 }
 0x86c   :  { %v3305_v44 = vmul.f32 -1.442695, %v2941_v63 }
 0x86d   :  { %3577 = vpow2.f32 %v3304_v4 }
 0x86e   :  { %3579 = vpow2.f32 %v3305_v44 }
 0x86f   :  { %3581 = vtanh.f32 %v2943_v62 }
 0x870   :  { %3583 = vpow2.f32 %v3306_v38 }
 0x877   :  { %v3578_v39 = vpop.eup %3577 }
 0x878   :  { %v2953_v40 = vadd.f32 1.0, %v3578_v39  ;;  %v3580_v41 = vpop.eup %3579 }
 0x879   :  { %v2954_v42 = vadd.f32 1.0, %v3580_v41  ;;  %v3582_v43 = vpop.eup %3581 }
 0x87a   :  { %3585 = vrcp.f32 %v2953_v40  ;;  %v3584_v45 = vpop.eup %3583 }
 0x87b   :  { %3587 = vrcp.f32 %v2954_v42  ;;  %v2955_v48 = vadd.f32 1.0, %v3584_v45 }
 0x87d   :  { %3589 = vrcp.f32 %v2955_v48 }
 0x884   :  { %v3586_v46 = vpop.eup %3585 }
 0x885   :  { %v2964_v37 = vmul.f32 %v3586_v46, %v3582_v43  ;;  %v3588_v47 = vpop.eup %3587 }
 0x886   :  { %v2963_v30 = vmul.f32 %v3588_v47, %v2655_v36 }
 0x887   :  { %v3590_v12 = vpop.eup %3589 }
 0x888   :  { %v2965_v8 = vadd.f32 %v2964_v37, %v2963_v30 }
 0x88a   :  { %3591 = vtanh.f32 %v2965_v8 }
 0x894   :  { %v3592_v23 = vpop.eup %3591 }
 0x895   :  { %v2967_v31 = vmul.f32 %v3592_v23, %v3590_v12 }
 0x897   :  { %v2968_v15 = vpack.c.bf16 %v2967_v31, %v2967_v31 }
 0x899   :  { %2970 = vst [vmem:[#allocation11 + $0x1c] sm:$0xf] %v2968_v15 }
 0x89a   :  { %3670 = shalt.err (!%p3667_p0)
}
 0x89b   :  { %s3671_s6 = scalar_lea.hbm %s4331_s4, 512 }
 0x89c   :  { %p3672_p1 = scmp.ne.s32.totalorder %s4331_s4, %s3671_s6  ;;  %p3675_p2 = scmp.lt.u32.totalorder %s3671_s6, %s4331_s4 }
 0x89e   :  { %p3677_p3 = pnand %p3675_p2, %p3672_p1 }
 0x8a0   :  { %3680 = shalt.err (!%p3677_p3)
}
 0x8a1   :  { %2984 = dma.vmem_to_hbm [thread:$0]  %s2979_s26, 512, %s4331_s4, [#allocation7], %s3691_s1, %s3691_s1, %s3692_s13  }
 0x8a2   :  { %3685 = dma.done.wait [#allocation7], 512  }
 0x8a3   :  { %3686 = vsyncadd [#allocation7], 4294966784 }
 0x8a4   :  { %2988 = vsyncpa [#allocation6], 1 }
 0x8a5   :  { %2989 = vsyncpa [#allocation9], 1 }
 0x8a6   :  { %2990 = vsyncpa [#allocation7], 1 }

</bundles_post_ra>
